<compile_context>
chip_gen: v5e
topology: v5e:2x2
jax: 0.10.0
libtpu: 0.0.40
codegen_flags: <defaults>
</compile_context>

<pallas_src>
import functools
import math

import jax
import jax.numpy as jnp
from jax.experimental import pallas as pl
from jax.experimental.pallas import tpu as pltpu

_EPS = 1e-5  # nn.GroupNorm default eps


def modern_resblock_kernel(x_ref,
                           dw_w_ref, dw_b_ref,
                           gmask_ref, gn_w_ref, gn_b_ref,
                           pw1_w_ref, pw1_b_ref,
                           pw2_w_ref, pw2_b_ref,
                           gamma_ref,
                           o_ref, *, width, kh, kw, eps):
    """One block of Nb packed samples per grid step, layout (P=Nb*C, H*W), lane-dense."""
    x = x_ref[...]                           # (P, HW) float32
    p, hw = x.shape
    ph, pw = kh // 2, kw // 2

    # ---- circular rolls in the flattened (h*W + w) layout ---------------------------
    # pltpu.roll matches jnp.roll semantics: out[i] = in[(i - shift) % n].
    def flat_roll(v, s):
        s = s % hw
        return v if s == 0 else pltpu.roll(v, s, axis=1)

    # Roll by sh along H == exact flat roll by sh*W (wrap-around is automatically right).
    def h_roll(v, sh):
        return flat_roll(v, sh * width)

    # Roll by sw along W: primary flat roll is correct except for the |sw| columns that
    # wrap across a row boundary; fix those with a second roll + lane-mask select.
    lane_w = jax.lax.broadcasted_iota(jnp.int32, (1, hw), 1) % width

    def w_roll(v, sw):
        if sw == 0:
            return v
        prim = flat_roll(v, sw)
        if sw > 0:
            alt = flat_roll(v, sw - width)
            keep = lane_w >= sw
        else:
            alt = flat_roll(v, sw + width)
            keep = lane_w < (width + sw)
        return jnp.where(keep, prim, alt)

    # ---- depthwise kh x kw circular conv (cross-correlation, matches PyTorch) -------
    dw_w = dw_w_ref[...]                     # (P, kh*kw); tap k = i*kw + j <-> w[c,0,i,j]
    partials = []
    for j in range(kw):                      # outer over W taps: reuse column-rolled copy
        xw = w_roll(x, pw - j)
        pacc = None
        for i in range(kh):                  # H taps are pure flat rolls
            k = i * kw + j
            term = dw_w[:, k:k + 1] * h_roll(xw, ph - i)
            pacc = term if pacc is None else pacc + term
        partials.append(pacc)
    # Tree-sum the per-column partials (shorter dependence chain than one serial chain).
    while len(partials) > 1:
        nxt = [partials[k] + partials[k + 1] for k in range(0, len(partials) - 1, 2)]
        if len(partials) % 2:
            nxt.append(partials[-1])
        partials = nxt
    y = partials[0] + dw_b_ref[...]          # (P, HW)

    # ---- GroupNorm: fused sum/sumsq + pre-scaled group-averaging mask ----------------
    s1 = jnp.sum(y, axis=1, keepdims=True)           # (P, 1)
    s2 = jnp.sum(y * y, axis=1, keepdims=True)       # (P, 1)
    gmask = gmask_ref[...]                            # (P, P), rows pre-scaled by 1/(cpg*HW)
    mean_c = jnp.dot(gmask, s1, preferred_element_type=jnp.float32)   # (P, 1)
    ex2_c = jnp.dot(gmask, s2, preferred_element_type=jnp.float32)    # (P, 1)
    var_c = ex2_c - mean_c * mean_c                   # biased variance (PyTorch GN)
    scale_c = gn_w_ref[...] * jax.lax.rsqrt(var_c + eps)
    shift_c = gn_b_ref[...] - mean_c * scale_c
    yn = y * scale_c + shift_c                        # single fused elementwise pass

    # ---- pwconv1 (MXU, bf16 operands, f32 acc) -> Mish -> pwconv2 --------------------
    h1 = jnp.dot(pw1_w_ref[...], yn.astype(jnp.bfloat16),
                 preferred_element_type=jnp.float32) + pw1_b_ref[...]     # (Nb*4C, HW)

    # Mish via a single EUP exp + one approx reciprocal:
    #   u = exp(-|x|);  tanh(softplus(x)) = num/den  (stable for both signs)
    u = jnp.exp(-jnp.abs(h1))
    nonneg = h1 >= 0.0
    num = jnp.where(nonneg, 1.0 + 2.0 * u, u * (u + 2.0))
    den = num + jnp.where(nonneg, 2.0 * (u * u), 2.0)
    act = h1 * num * pl.reciprocal(den, approx=True)

    h2 = jnp.dot(pw2_w_ref[...], act.astype(jnp.bfloat16),
                 preferred_element_type=jnp.float32) + pw2_b_ref[...]     # (P, HW)

    # ---- layer scale + residual -------------------------------------------------------
    o_ref[...] = x + gamma_ref[...] * h2


def _choose_block_samples(n, c, hw, itemsize=4, vmem_budget=24 << 20):
    """Largest Nb dividing N that (a) keeps >=2 grid steps when N>=2 (two TCs on v7x) and
    (b) keeps the per-step working set (~22x the input block: 2x double-buffered in/out,
    f32 activations incl. the 4C-wide hidden tensors, roll temporaries) inside a budget
    that fits the 32 MiB default scoped VMEM on v5e/v6e/v7x."""
    best = 1
    for nb in range(1, n + 1):
        if n % nb:
            continue
        if n >= 2 and n // nb < 2:
            continue
        if 22 * nb * c * hw * itemsize > vmem_budget:
            continue
        best = nb
    return best


def _prep_params(params, nb, groups, hw):
    """Host-side (one time): reshape PyTorch-shaped params to the packed kernel layout."""
    c = params["gamma"].shape[0]
    hidden = params["pw1_w"].shape[0]
    cpg = c // groups
    p = nb * c

    def col(v):  # (C,) -> tiled (P, 1) float32
        return jnp.tile(jnp.asarray(v, jnp.float32).reshape(c, 1), (nb, 1))

    def col_h(v):  # (4C,) -> tiled (Nb*4C, 1) float32
        return jnp.tile(jnp.asarray(v, jnp.float32).reshape(hidden, 1), (nb, 1))

    dw_w = jnp.tile(jnp.asarray(params["dw_w"], jnp.float32).reshape(c, -1), (nb, 1))

    # Pre-scaled group-averaging mask: packed row r belongs to group r // cpg.
    gid = jnp.arange(p, dtype=jnp.int32) // cpg
    gmask = (gid[:, None] == gid[None, :]).astype(jnp.float32) / float(cpg * hw)

    # Block-diagonal pointwise weights (same block per packed sample), bf16 for the MXU.
    eye = jnp.eye(nb, dtype=jnp.float32)
    pw1_w = jnp.kron(eye, jnp.asarray(params["pw1_w"], jnp.float32).reshape(hidden, c))
    pw2_w = jnp.kron(eye, jnp.asarray(params["pw2_w"], jnp.float32).reshape(c, hidden))

    return [
        dw_w,                                  # (P, kh*kw)
        col(params["dw_b"]),                   # (P, 1)
        gmask,                                 # (P, P)
        col(params["gn_w"]),                   # (P, 1)
        col(params["gn_b"]),                   # (P, 1)
        pw1_w.astype(jnp.bfloat16),            # (Nb*4C, P)
        col_h(params["pw1_b"]),                # (Nb*4C, 1)
        pw2_w.astype(jnp.bfloat16),            # (P, Nb*4C)
        col(params["pw2_b"]),                  # (P, 1)
        col(params["gamma"]),                  # (P, 1)
    ]


def modern_resblock(x, params, *, groups=2, eps=_EPS, block_samples=None):
    """x: (N, C, H, W) float32.  Returns (N, C, H, W)."""
    n, c, h, w = x.shape
    assert c % groups == 0, "channels must be divisible by the number of groups"
    hw = h * w

    nb = block_samples if block_samples is not None else _choose_block_samples(n, c, hw)
    assert n % nb == 0
    g = n // nb
    p = nb * c

    # Pack Nb samples' channels into the sublane axis: (N, C, H*W) -> (G, Nb*C, H*W).
    x_flat = x.reshape(g, p, hw)
    plist = _prep_params(params, nb, groups, hw)

    def full_spec(a):
        nd = a.ndim
        return pl.BlockSpec(a.shape, lambda i, _nd=nd: (0,) * _nd)

    in_specs = [pl.BlockSpec((pl.Squeezed(), p, hw), lambda i: (i, 0, 0))]
    in_specs += [full_spec(a) for a in plist]
    out_spec = pl.BlockSpec((pl.Squeezed(), p, hw), lambda i: (i, 0, 0))

    kh, kw = params["dw_w"].shape[2], params["dw_w"].shape[3]
    kern = functools.partial(modern_resblock_kernel, width=w, kh=kh, kw=kw, eps=eps)
    out = pl.pallas_call(
        kern,
        out_shape=jax.ShapeDtypeStruct((g, p, hw), x.dtype),
        grid=(g,),  # batch blocks; "parallel" so v7x's 2 TensorCores split them
        in_specs=in_specs,
        out_specs=out_spec,
        compiler_params=pltpu.CompilerParams(dimension_semantics=("parallel",)),
    )(x_flat, *plist)
    return out.reshape(n, c, h, w)


def init_params(key, channels, dw_kernel=5):
    """Deterministic synthetic parameters with the PyTorch module's shapes."""
    c = channels
    ks = jax.random.split(key, 8)

    def rnd(k, shape, scale):
        return (scale * jax.random.normal(k, shape)).astype(jnp.float32)

    return {
        "dw_w": rnd(ks[0], (c, 1, dw_kernel, dw_kernel), 1.0 / dw_kernel),
        "dw_b": rnd(ks[1], (c,), 0.05),
        "gn_w": jnp.ones((c,), jnp.float32) + rnd(ks[2], (c,), 0.05),
        "gn_b": rnd(ks[3], (c,), 0.05),
        "pw1_w": rnd(ks[4], (4 * c, c, 1, 1), 1.0 / math.sqrt(c)),
        "pw1_b": rnd(ks[5], (4 * c,), 0.05),
        "pw2_w": rnd(ks[6], (c, 4 * c, 1, 1), 1.0 / math.sqrt(4 * c)),
        "pw2_b": rnd(ks[7], (c,), 0.05),
        "gamma": jnp.full((c,), 1e-6, jnp.float32),  # module init: torch.ones(C) * 1e-6
    }


def _reference(x, params, *, groups=2, eps=_EPS):
    """Pure-JAX reference of the PyTorch module forward (f32)."""
    n, c, h, w = x.shape
    dw_w = params["dw_w"]
    kh, kw = dw_w.shape[2], dw_w.shape[3]
    ph, pw = kh // 2, kw // 2
    y = jnp.zeros_like(x)
    for i in range(kh):
        for j in range(kw):
            y = y + dw_w[:, 0, i, j][None, :, None, None] * jnp.roll(
                x, (ph - i, pw - j), axis=(2, 3))
    y = y + params["dw_b"][None, :, None, None]
    yg = y.reshape(n, groups, c // groups, h, w)
    mean = yg.mean(axis=(2, 3, 4), keepdims=True)
    var = yg.var(axis=(2, 3, 4), keepdims=True)
    yn = ((yg - mean) * jax.lax.rsqrt(var + eps)).reshape(n, c, h, w)
    yn = yn * params["gn_w"][None, :, None, None] + params["gn_b"][None, :, None, None]
    h1 = jnp.einsum("oc,nchw->nohw", params["pw1_w"][:, :, 0, 0], yn)
    h1 = h1 + params["pw1_b"][None, :, None, None]
    act = h1 * jnp.tanh(jnp.logaddexp(0.0, h1))        # Mish
    h2 = jnp.einsum("oc,nchw->nohw", params["pw2_w"][:, :, 0, 0], act)
    h2 = h2 + params["pw2_b"][None, :, None, None]
    return x + params["gamma"][None, :, None, None] * h2


if __name__ == "__main__":
    key = jax.random.PRNGKey(0)
    kx, kp = jax.random.split(key)
    N, C, H, W = 2, 4, 16, 16
    x = jax.random.normal(kx, (N, C, H, W), dtype=jnp.float32)
    params = init_params(kp, C)

    out = jax.block_until_ready(modern_resblock(x, params, groups=2))
    assert out.shape == x.shape and out.dtype == x.dtype
    assert bool(jnp.all(jnp.isfinite(out)))

    # Sanity check against a pure-JAX reference with gamma=1 so the non-residual branch
    # is visible (tolerance covers bf16 MXU operands + approx reciprocal in Mish).
    params_chk = dict(params, gamma=jnp.ones((C,), jnp.float32))
    got = jax.block_until_ready(modern_resblock(x, params_chk, groups=2))
    want = _reference(x, params_chk, groups=2)
    max_err = float(jnp.max(jnp.abs(got - want)))
    assert max_err < 0.1, f"max abs err {max_err}"

    print("KERNEL_OK")
</pallas_src>

<mosaic_0001>
module attributes {stable_mosaic.version = 11 : i64} {
  func.func @modern_resblock_kernel(%arg0: i32, %arg1: memref<1x4x256xf32, #tpu.memory_space<vmem>>, %arg2: memref<4x25xf32, #tpu.memory_space<vmem>>, %arg3: memref<4x1xf32, #tpu.memory_space<vmem>>, %arg4: memref<4x4xf32, #tpu.memory_space<vmem>>, %arg5: memref<4x1xf32, #tpu.memory_space<vmem>>, %arg6: memref<4x1xf32, #tpu.memory_space<vmem>>, %arg7: memref<16x4xbf16, #tpu.memory_space<vmem>>, %arg8: memref<16x1xf32, #tpu.memory_space<vmem>>, %arg9: memref<4x16xbf16, #tpu.memory_space<vmem>>, %arg10: memref<4x1xf32, #tpu.memory_space<vmem>>, %arg11: memref<4x1xf32, #tpu.memory_space<vmem>>, %arg12: memref<1x4x256xf32, #tpu.memory_space<vmem>>) attributes {dimension_semantics = [#tpu.dimension_semantics<parallel>], iteration_bounds = array<i64: 2>, scalar_prefetch = 0 : i64, scratch_operands = 0 : i64, tpu.core_type = #tpu.core_type<tc>, window_params = [{transform_indices = @transform_0, window_bounds = array<i64: 1, 4, 256>}, {pipeline_mode = #tpu.pipeline_mode<synchronous>, transform_indices = @transform_1, window_bounds = array<i64: 4, 25>}, {pipeline_mode = #tpu.pipeline_mode<synchronous>, transform_indices = @transform_2, window_bounds = array<i64: 4, 1>}, {pipeline_mode = #tpu.pipeline_mode<synchronous>, transform_indices = @transform_3, window_bounds = array<i64: 4, 4>}, {pipeline_mode = #tpu.pipeline_mode<synchronous>, transform_indices = @transform_4, window_bounds = array<i64: 4, 1>}, {pipeline_mode = #tpu.pipeline_mode<synchronous>, transform_indices = @transform_5, window_bounds = array<i64: 4, 1>}, {pipeline_mode = #tpu.pipeline_mode<synchronous>, transform_indices = @transform_6, window_bounds = array<i64: 16, 4>}, {pipeline_mode = #tpu.pipeline_mode<synchronous>, transform_indices = @transform_7, window_bounds = array<i64: 16, 1>}, {pipeline_mode = #tpu.pipeline_mode<synchronous>, transform_indices = @transform_8, window_bounds = array<i64: 4, 16>}, {pipeline_mode = #tpu.pipeline_mode<synchronous>, transform_indices = @transform_9, window_bounds = array<i64: 4, 1>}, {pipeline_mode = #tpu.pipeline_mode<synchronous>, transform_indices = @transform_10, window_bounds = array<i64: 4, 1>}, {transform_indices = @transform_11, window_bounds = array<i64: 1, 4, 256>}]} {
    %c0 = arith.constant 0 : index
    %c0_0 = arith.constant 0 : index
    %c0_1 = arith.constant 0 : index
    %0 = vector.load %arg1[%c0, %c0_0, %c0_1] : memref<1x4x256xf32, #tpu.memory_space<vmem>>, vector<1x4x256xf32>
    %1 = vector.shape_cast %0 : vector<1x4x256xf32> to vector<4x256xf32>
    %2 = tpu.iota {dimensions = array<i32: 1>} : vector<1x256xi32>
    %c16_i32 = arith.constant 16 : i32
    %c0_i32 = arith.constant 0 : i32
    %3 = arith.cmpi eq, %c16_i32, %c0_i32 : i32
    %c1_i32 = arith.constant 1 : i32
    %4 = arith.select %3, %c1_i32, %c16_i32 : i32
    %5 = vector.broadcast %4 : i32 to vector<1x256xi32>
    %6 = arith.remsi %2, %5 : vector<1x256xi32>
    %c0_i32_2 = arith.constant 0 : i32
    %7 = vector.broadcast %c0_i32_2 : i32 to vector<1x256xi32>
    %8 = arith.cmpi ne, %6, %7 : vector<1x256xi32>
    %c0_i32_3 = arith.constant 0 : i32
    %9 = vector.broadcast %c0_i32_3 : i32 to vector<1x256xi32>
    %10 = arith.cmpi slt, %6, %9 : vector<1x256xi32>
    %c0_i32_4 = arith.constant 0 : i32
    %11 = arith.cmpi slt, %4, %c0_i32_4 : i32
    %12 = vector.broadcast %11 : i1 to vector<1x256xi1>
    %13 = vector.broadcast %12 : vector<1x256xi1> to vector<1x256xi1>
    %14 = arith.xori %10, %13 : vector<1x256xi1>
    %15 = arith.andi %14, %8 : vector<1x256xi1>
    %16 = vector.broadcast %4 : i32 to vector<1x256xi32>
    %17 = arith.addi %6, %16 : vector<1x256xi32>
    %18 = arith.select %15, %17, %6 : vector<1x256xi1>, vector<1x256xi32>
    %c0_5 = arith.constant 0 : index
    %c0_6 = arith.constant 0 : index
    %19 = vector.load %arg2[%c0_5, %c0_6] : memref<4x25xf32, #tpu.memory_space<vmem>>, vector<4x25xf32>
    %c2_i32 = arith.constant 2 : i32
    %20 = tpu.dynamic_rotate %1 by %c2_i32 dim 1 : vector<4x256xf32>, i32 -> vector<4x256xf32>
    %c242_i32 = arith.constant 242 : i32
    %21 = tpu.dynamic_rotate %1 by %c242_i32 dim 1 : vector<4x256xf32>, i32 -> vector<4x256xf32>
    %c2_i32_7 = arith.constant 2 : i32
    %22 = vector.broadcast %c2_i32_7 : i32 to vector<1x256xi32>
    %23 = arith.cmpi sge, %18, %22 : vector<1x256xi32>
    %24 = vector.shape_cast %23 : vector<1x256xi1> to vector<1x256xi1>
    %25 = vector.broadcast %24 : vector<1x256xi1> to vector<4x256xi1>
    %26 = arith.select %25, %20, %21 : vector<4x256xi1>, vector<4x256xf32>
    %27 = vector.extract_strided_slice %19 {offsets = [0, 0], sizes = [4, 1], strides = [1, 1]} : vector<4x25xf32> to vector<4x1xf32>
    %c32_i32 = arith.constant 32 : i32
    %28 = tpu.dynamic_rotate %26 by %c32_i32 dim 1 : vector<4x256xf32>, i32 -> vector<4x256xf32>
    %29 = vector.broadcast %27 : vector<4x1xf32> to vector<4x256xf32>
    %30 = arith.mulf %29, %28 : vector<4x256xf32>
    %31 = vector.extract_strided_slice %19 {offsets = [0, 5], sizes = [4, 1], strides = [1, 1]} : vector<4x25xf32> to vector<4x1xf32>
    %c16_i32_8 = arith.constant 16 : i32
    %32 = tpu.dynamic_rotate %26 by %c16_i32_8 dim 1 : vector<4x256xf32>, i32 -> vector<4x256xf32>
    %33 = vector.broadcast %31 : vector<4x1xf32> to vector<4x256xf32>
    %34 = arith.mulf %33, %32 : vector<4x256xf32>
    %35 = arith.addf %30, %34 : vector<4x256xf32>
    %36 = vector.extract_strided_slice %19 {offsets = [0, 10], sizes = [4, 1], strides = [1, 1]} : vector<4x25xf32> to vector<4x1xf32>
    %37 = vector.broadcast %36 : vector<4x1xf32> to vector<4x256xf32>
    %38 = arith.mulf %37, %26 : vector<4x256xf32>
    %39 = arith.addf %35, %38 : vector<4x256xf32>
    %40 = vector.extract_strided_slice %19 {offsets = [0, 15], sizes = [4, 1], strides = [1, 1]} : vector<4x25xf32> to vector<4x1xf32>
    %c240_i32 = arith.constant 240 : i32
    %41 = tpu.dynamic_rotate %26 by %c240_i32 dim 1 : vector<4x256xf32>, i32 -> vector<4x256xf32>
    %42 = vector.broadcast %40 : vector<4x1xf32> to vector<4x256xf32>
    %43 = arith.mulf %42, %41 : vector<4x256xf32>
    %44 = arith.addf %39, %43 : vector<4x256xf32>
    %45 = vector.extract_strided_slice %19 {offsets = [0, 20], sizes = [4, 1], strides = [1, 1]} : vector<4x25xf32> to vector<4x1xf32>
    %c224_i32 = arith.constant 224 : i32
    %46 = tpu.dynamic_rotate %26 by %c224_i32 dim 1 : vector<4x256xf32>, i32 -> vector<4x256xf32>
    %47 = vector.broadcast %45 : vector<4x1xf32> to vector<4x256xf32>
    %48 = arith.mulf %47, %46 : vector<4x256xf32>
    %49 = arith.addf %44, %48 : vector<4x256xf32>
    %c1_i32_9 = arith.constant 1 : i32
    %50 = tpu.dynamic_rotate %1 by %c1_i32_9 dim 1 : vector<4x256xf32>, i32 -> vector<4x256xf32>
    %c241_i32 = arith.constant 241 : i32
    %51 = tpu.dynamic_rotate %1 by %c241_i32 dim 1 : vector<4x256xf32>, i32 -> vector<4x256xf32>
    %c1_i32_10 = arith.constant 1 : i32
    %52 = vector.broadcast %c1_i32_10 : i32 to vector<1x256xi32>
    %53 = arith.cmpi sge, %18, %52 : vector<1x256xi32>
    %54 = vector.shape_cast %53 : vector<1x256xi1> to vector<1x256xi1>
    %55 = vector.broadcast %54 : vector<1x256xi1> to vector<4x256xi1>
    %56 = arith.select %55, %50, %51 : vector<4x256xi1>, vector<4x256xf32>
    %57 = vector.extract_strided_slice %19 {offsets = [0, 1], sizes = [4, 1], strides = [1, 1]} : vector<4x25xf32> to vector<4x1xf32>
    %c32_i32_11 = arith.constant 32 : i32
    %58 = tpu.dynamic_rotate %56 by %c32_i32_11 dim 1 : vector<4x256xf32>, i32 -> vector<4x256xf32>
    %59 = vector.broadcast %57 : vector<4x1xf32> to vector<4x256xf32>
    %60 = arith.mulf %59, %58 : vector<4x256xf32>
    %61 = vector.extract_strided_slice %19 {offsets = [0, 6], sizes = [4, 1], strides = [1, 1]} : vector<4x25xf32> to vector<4x1xf32>
    %c16_i32_12 = arith.constant 16 : i32
    %62 = tpu.dynamic_rotate %56 by %c16_i32_12 dim 1 : vector<4x256xf32>, i32 -> vector<4x256xf32>
    %63 = vector.broadcast %61 : vector<4x1xf32> to vector<4x256xf32>
    %64 = arith.mulf %63, %62 : vector<4x256xf32>
    %65 = arith.addf %60, %64 : vector<4x256xf32>
    %66 = vector.extract_strided_slice %19 {offsets = [0, 11], sizes = [4, 1], strides = [1, 1]} : vector<4x25xf32> to vector<4x1xf32>
    %67 = vector.broadcast %66 : vector<4x1xf32> to vector<4x256xf32>
    %68 = arith.mulf %67, %56 : vector<4x256xf32>
    %69 = arith.addf %65, %68 : vector<4x256xf32>
    %70 = vector.extract_strided_slice %19 {offsets = [0, 16], sizes = [4, 1], strides = [1, 1]} : vector<4x25xf32> to vector<4x1xf32>
    %c240_i32_13 = arith.constant 240 : i32
    %71 = tpu.dynamic_rotate %56 by %c240_i32_13 dim 1 : vector<4x256xf32>, i32 -> vector<4x256xf32>
    %72 = vector.broadcast %70 : vector<4x1xf32> to vector<4x256xf32>
    %73 = arith.mulf %72, %71 : vector<4x256xf32>
    %74 = arith.addf %69, %73 : vector<4x256xf32>
    %75 = vector.extract_strided_slice %19 {offsets = [0, 21], sizes = [4, 1], strides = [1, 1]} : vector<4x25xf32> to vector<4x1xf32>
    %c224_i32_14 = arith.constant 224 : i32
    %76 = tpu.dynamic_rotate %56 by %c224_i32_14 dim 1 : vector<4x256xf32>, i32 -> vector<4x256xf32>
    %77 = vector.broadcast %75 : vector<4x1xf32> to vector<4x256xf32>
    %78 = arith.mulf %77, %76 : vector<4x256xf32>
    %79 = arith.addf %74, %78 : vector<4x256xf32>
    %80 = vector.extract_strided_slice %19 {offsets = [0, 2], sizes = [4, 1], strides = [1, 1]} : vector<4x25xf32> to vector<4x1xf32>
    %c32_i32_15 = arith.constant 32 : i32
    %81 = tpu.dynamic_rotate %1 by %c32_i32_15 dim 1 : vector<4x256xf32>, i32 -> vector<4x256xf32>
    %82 = vector.broadcast %80 : vector<4x1xf32> to vector<4x256xf32>
    %83 = arith.mulf %82, %81 : vector<4x256xf32>
    %84 = vector.extract_strided_slice %19 {offsets = [0, 7], sizes = [4, 1], strides = [1, 1]} : vector<4x25xf32> to vector<4x1xf32>
    %c16_i32_16 = arith.constant 16 : i32
    %85 = tpu.dynamic_rotate %1 by %c16_i32_16 dim 1 : vector<4x256xf32>, i32 -> vector<4x256xf32>
    %86 = vector.broadcast %84 : vector<4x1xf32> to vector<4x256xf32>
    %87 = arith.mulf %86, %85 : vector<4x256xf32>
    %88 = arith.addf %83, %87 : vector<4x256xf32>
    %89 = vector.extract_strided_slice %19 {offsets = [0, 12], sizes = [4, 1], strides = [1, 1]} : vector<4x25xf32> to vector<4x1xf32>
    %90 = vector.broadcast %89 : vector<4x1xf32> to vector<4x256xf32>
    %91 = arith.mulf %90, %1 : vector<4x256xf32>
    %92 = arith.addf %88, %91 : vector<4x256xf32>
    %93 = vector.extract_strided_slice %19 {offsets = [0, 17], sizes = [4, 1], strides = [1, 1]} : vector<4x25xf32> to vector<4x1xf32>
    %c240_i32_17 = arith.constant 240 : i32
    %94 = tpu.dynamic_rotate %1 by %c240_i32_17 dim 1 : vector<4x256xf32>, i32 -> vector<4x256xf32>
    %95 = vector.broadcast %93 : vector<4x1xf32> to vector<4x256xf32>
    %96 = arith.mulf %95, %94 : vector<4x256xf32>
    %97 = arith.addf %92, %96 : vector<4x256xf32>
    %98 = vector.extract_strided_slice %19 {offsets = [0, 22], sizes = [4, 1], strides = [1, 1]} : vector<4x25xf32> to vector<4x1xf32>
    %c224_i32_18 = arith.constant 224 : i32
    %99 = tpu.dynamic_rotate %1 by %c224_i32_18 dim 1 : vector<4x256xf32>, i32 -> vector<4x256xf32>
    %100 = vector.broadcast %98 : vector<4x1xf32> to vector<4x256xf32>
    %101 = arith.mulf %100, %99 : vector<4x256xf32>
    %102 = arith.addf %97, %101 : vector<4x256xf32>
    %c255_i32 = arith.constant 255 : i32
    %103 = tpu.dynamic_rotate %1 by %c255_i32 dim 1 : vector<4x256xf32>, i32 -> vector<4x256xf32>
    %c15_i32 = arith.constant 15 : i32
    %104 = tpu.dynamic_rotate %1 by %c15_i32 dim 1 : vector<4x256xf32>, i32 -> vector<4x256xf32>
    %c15_i32_19 = arith.constant 15 : i32
    %105 = vector.broadcast %c15_i32_19 : i32 to vector<1x256xi32>
    %106 = arith.cmpi slt, %18, %105 : vector<1x256xi32>
    %107 = vector.shape_cast %106 : vector<1x256xi1> to vector<1x256xi1>
    %108 = vector.broadcast %107 : vector<1x256xi1> to vector<4x256xi1>
    %109 = arith.select %108, %103, %104 : vector<4x256xi1>, vector<4x256xf32>
    %110 = vector.extract_strided_slice %19 {offsets = [0, 3], sizes = [4, 1], strides = [1, 1]} : vector<4x25xf32> to vector<4x1xf32>
    %c32_i32_20 = arith.constant 32 : i32
    %111 = tpu.dynamic_rotate %109 by %c32_i32_20 dim 1 : vector<4x256xf32>, i32 -> vector<4x256xf32>
    %112 = vector.broadcast %110 : vector<4x1xf32> to vector<4x256xf32>
    %113 = arith.mulf %112, %111 : vector<4x256xf32>
    %114 = vector.extract_strided_slice %19 {offsets = [0, 8], sizes = [4, 1], strides = [1, 1]} : vector<4x25xf32> to vector<4x1xf32>
    %c16_i32_21 = arith.constant 16 : i32
    %115 = tpu.dynamic_rotate %109 by %c16_i32_21 dim 1 : vector<4x256xf32>, i32 -> vector<4x256xf32>
    %116 = vector.broadcast %114 : vector<4x1xf32> to vector<4x256xf32>
    %117 = arith.mulf %116, %115 : vector<4x256xf32>
    %118 = arith.addf %113, %117 : vector<4x256xf32>
    %119 = vector.extract_strided_slice %19 {offsets = [0, 13], sizes = [4, 1], strides = [1, 1]} : vector<4x25xf32> to vector<4x1xf32>
    %120 = vector.broadcast %119 : vector<4x1xf32> to vector<4x256xf32>
    %121 = arith.mulf %120, %109 : vector<4x256xf32>
    %122 = arith.addf %118, %121 : vector<4x256xf32>
    %123 = vector.extract_strided_slice %19 {offsets = [0, 18], sizes = [4, 1], strides = [1, 1]} : vector<4x25xf32> to vector<4x1xf32>
    %c240_i32_22 = arith.constant 240 : i32
    %124 = tpu.dynamic_rotate %109 by %c240_i32_22 dim 1 : vector<4x256xf32>, i32 -> vector<4x256xf32>
    %125 = vector.broadcast %123 : vector<4x1xf32> to vector<4x256xf32>
    %126 = arith.mulf %125, %124 : vector<4x256xf32>
    %127 = arith.addf %122, %126 : vector<4x256xf32>
    %128 = vector.extract_strided_slice %19 {offsets = [0, 23], sizes = [4, 1], strides = [1, 1]} : vector<4x25xf32> to vector<4x1xf32>
    %c224_i32_23 = arith.constant 224 : i32
    %129 = tpu.dynamic_rotate %109 by %c224_i32_23 dim 1 : vector<4x256xf32>, i32 -> vector<4x256xf32>
    %130 = vector.broadcast %128 : vector<4x1xf32> to vector<4x256xf32>
    %131 = arith.mulf %130, %129 : vector<4x256xf32>
    %132 = arith.addf %127, %131 : vector<4x256xf32>
    %c254_i32 = arith.constant 254 : i32
    %133 = tpu.dynamic_rotate %1 by %c254_i32 dim 1 : vector<4x256xf32>, i32 -> vector<4x256xf32>
    %c14_i32 = arith.constant 14 : i32
    %134 = tpu.dynamic_rotate %1 by %c14_i32 dim 1 : vector<4x256xf32>, i32 -> vector<4x256xf32>
    %c14_i32_24 = arith.constant 14 : i32
    %135 = vector.broadcast %c14_i32_24 : i32 to vector<1x256xi32>
    %136 = arith.cmpi slt, %18, %135 : vector<1x256xi32>
    %137 = vector.shape_cast %136 : vector<1x256xi1> to vector<1x256xi1>
    %138 = vector.broadcast %137 : vector<1x256xi1> to vector<4x256xi1>
    %139 = arith.select %138, %133, %134 : vector<4x256xi1>, vector<4x256xf32>
    %140 = vector.extract_strided_slice %19 {offsets = [0, 4], sizes = [4, 1], strides = [1, 1]} : vector<4x25xf32> to vector<4x1xf32>
    %c32_i32_25 = arith.constant 32 : i32
    %141 = tpu.dynamic_rotate %139 by %c32_i32_25 dim 1 : vector<4x256xf32>, i32 -> vector<4x256xf32>
    %142 = vector.broadcast %140 : vector<4x1xf32> to vector<4x256xf32>
    %143 = arith.mulf %142, %141 : vector<4x256xf32>
    %144 = vector.extract_strided_slice %19 {offsets = [0, 9], sizes = [4, 1], strides = [1, 1]} : vector<4x25xf32> to vector<4x1xf32>
    %c16_i32_26 = arith.constant 16 : i32
    %145 = tpu.dynamic_rotate %139 by %c16_i32_26 dim 1 : vector<4x256xf32>, i32 -> vector<4x256xf32>
    %146 = vector.broadcast %144 : vector<4x1xf32> to vector<4x256xf32>
    %147 = arith.mulf %146, %145 : vector<4x256xf32>
    %148 = arith.addf %143, %147 : vector<4x256xf32>
    %149 = vector.extract_strided_slice %19 {offsets = [0, 14], sizes = [4, 1], strides = [1, 1]} : vector<4x25xf32> to vector<4x1xf32>
    %150 = vector.broadcast %149 : vector<4x1xf32> to vector<4x256xf32>
    %151 = arith.mulf %150, %139 : vector<4x256xf32>
    %152 = arith.addf %148, %151 : vector<4x256xf32>
    %153 = vector.extract_strided_slice %19 {offsets = [0, 19], sizes = [4, 1], strides = [1, 1]} : vector<4x25xf32> to vector<4x1xf32>
    %c240_i32_27 = arith.constant 240 : i32
    %154 = tpu.dynamic_rotate %139 by %c240_i32_27 dim 1 : vector<4x256xf32>, i32 -> vector<4x256xf32>
    %155 = vector.broadcast %153 : vector<4x1xf32> to vector<4x256xf32>
    %156 = arith.mulf %155, %154 : vector<4x256xf32>
    %157 = arith.addf %152, %156 : vector<4x256xf32>
    %158 = vector.extract_strided_slice %19 {offsets = [0, 24], sizes = [4, 1], strides = [1, 1]} : vector<4x25xf32> to vector<4x1xf32>
    %c224_i32_28 = arith.constant 224 : i32
    %159 = tpu.dynamic_rotate %139 by %c224_i32_28 dim 1 : vector<4x256xf32>, i32 -> vector<4x256xf32>
    %160 = vector.broadcast %158 : vector<4x1xf32> to vector<4x256xf32>
    %161 = arith.mulf %160, %159 : vector<4x256xf32>
    %162 = arith.addf %157, %161 : vector<4x256xf32>
    %163 = arith.addf %49, %79 : vector<4x256xf32>
    %164 = arith.addf %102, %132 : vector<4x256xf32>
    %165 = arith.addf %163, %164 : vector<4x256xf32>
    %166 = arith.addf %165, %162 : vector<4x256xf32>
    %c0_29 = arith.constant 0 : index
    %c0_30 = arith.constant 0 : index
    %167 = vector.load %arg3[%c0_29, %c0_30] : memref<4x1xf32, #tpu.memory_space<vmem>>, vector<4x1xf32>
    %168 = vector.broadcast %167 : vector<4x1xf32> to vector<4x256xf32>
    %169 = arith.addf %166, %168 : vector<4x256xf32>
    %cst = arith.constant dense<0.000000e+00> : vector<4xf32>
    %170 = vector.multi_reduction <add>, %169, %cst [1] : vector<4x256xf32> to vector<4xf32>
    %171 = vector.shape_cast %170 : vector<4xf32> to vector<4x1xf32>
    %172 = arith.mulf %169, %169 : vector<4x256xf32>
    %cst_31 = arith.constant dense<0.000000e+00> : vector<4xf32>
    %173 = vector.multi_reduction <add>, %172, %cst_31 [1] : vector<4x256xf32> to vector<4xf32>
    %174 = vector.shape_cast %173 : vector<4xf32> to vector<4x1xf32>
    %c0_32 = arith.constant 0 : index
    %c0_33 = arith.constant 0 : index
    %175 = vector.load %arg4[%c0_32, %c0_33] : memref<4x4xf32, #tpu.memory_space<vmem>>, vector<4x4xf32>
    %cst_34 = arith.constant dense<0.000000e+00> : vector<4x1xf32>
    %176 = tpu.matmul %175, %171, %cst_34 {dimension_numbers = #tpu.dot_dimension_numbers<[1], [0], [0], [1], [0, 0, 1, 1], [], []>} : vector<4x4xf32>, vector<4x1xf32>, vector<4x1xf32> -> vector<4x1xf32>
    %cst_35 = arith.constant dense<0.000000e+00> : vector<4x1xf32>
    %177 = tpu.matmul %175, %174, %cst_35 {dimension_numbers = #tpu.dot_dimension_numbers<[1], [0], [0], [1], [0, 0, 1, 1], [], []>} : vector<4x4xf32>, vector<4x1xf32>, vector<4x1xf32> -> vector<4x1xf32>
    %178 = arith.mulf %176, %176 : vector<4x1xf32>
    %179 = arith.subf %177, %178 : vector<4x1xf32>
    %c0_36 = arith.constant 0 : index
    %c0_37 = arith.constant 0 : index
    %180 = vector.load %arg5[%c0_36, %c0_37] : memref<4x1xf32, #tpu.memory_space<vmem>>, vector<4x1xf32>
    %cst_38 = arith.constant 9.99999974E-6 : f32
    %181 = vector.broadcast %cst_38 : f32 to vector<4x1xf32>
    %182 = arith.addf %179, %181 : vector<4x1xf32>
    %183 = math.rsqrt %182 : vector<4x1xf32>
    %184 = arith.mulf %180, %183 : vector<4x1xf32>
    %c0_39 = arith.constant 0 : index
    %c0_40 = arith.constant 0 : index
    %185 = vector.load %arg6[%c0_39, %c0_40] : memref<4x1xf32, #tpu.memory_space<vmem>>, vector<4x1xf32>
    %186 = arith.mulf %176, %184 : vector<4x1xf32>
    %187 = arith.subf %185, %186 : vector<4x1xf32>
    %188 = vector.broadcast %184 : vector<4x1xf32> to vector<4x256xf32>
    %189 = arith.mulf %169, %188 : vector<4x256xf32>
    %190 = vector.broadcast %187 : vector<4x1xf32> to vector<4x256xf32>
    %191 = arith.addf %189, %190 : vector<4x256xf32>
    %c0_41 = arith.constant 0 : index
    %c0_42 = arith.constant 0 : index
    %192 = vector.load %arg7[%c0_41, %c0_42] : memref<16x4xbf16, #tpu.memory_space<vmem>>, vector<16x4xbf16>
    %193 = arith.truncf %191 : vector<4x256xf32> to vector<4x256xbf16>
    %cst_43 = arith.constant dense<0.000000e+00> : vector<16x256xf32>
    %194 = tpu.matmul %192, %193, %cst_43 {dimension_numbers = #tpu.dot_dimension_numbers<[1], [0], [0], [1], [0, 0, 1, 1], [], []>} : vector<16x4xbf16>, vector<4x256xbf16>, vector<16x256xf32> -> vector<16x256xf32>
    %c0_44 = arith.constant 0 : index
    %c0_45 = arith.constant 0 : index
    %195 = vector.load %arg8[%c0_44, %c0_45] : memref<16x1xf32, #tpu.memory_space<vmem>>, vector<16x1xf32>
    %196 = vector.broadcast %195 : vector<16x1xf32> to vector<16x256xf32>
    %197 = arith.addf %194, %196 : vector<16x256xf32>
    %198 = math.absf %197 : vector<16x256xf32>
    %cst_46 = arith.constant 0.000000e+00 : f32
    %199 = vector.broadcast %cst_46 : f32 to vector<16x256xf32>
    %200 = arith.subf %199, %198 : vector<16x256xf32>
    %201 = math.exp %200 : vector<16x256xf32>
    %cst_47 = arith.constant 0.000000e+00 : f32
    %202 = vector.broadcast %cst_47 : f32 to vector<16x256xf32>
    %203 = arith.cmpf oge, %197, %202 : vector<16x256xf32>
    %cst_48 = arith.constant 2.000000e+00 : f32
    %204 = vector.broadcast %cst_48 : f32 to vector<16x256xf32>
    %205 = arith.mulf %204, %201 : vector<16x256xf32>
    %cst_49 = arith.constant 1.000000e+00 : f32
    %206 = vector.broadcast %cst_49 : f32 to vector<16x256xf32>
    %207 = arith.addf %206, %205 : vector<16x256xf32>
    %cst_50 = arith.constant 2.000000e+00 : f32
    %208 = vector.broadcast %cst_50 : f32 to vector<16x256xf32>
    %209 = arith.addf %201, %208 : vector<16x256xf32>
    %210 = arith.mulf %201, %209 : vector<16x256xf32>
    %211 = arith.select %203, %207, %210 : vector<16x256xi1>, vector<16x256xf32>
    %212 = arith.mulf %201, %201 : vector<16x256xf32>
    %cst_51 = arith.constant 2.000000e+00 : f32
    %213 = vector.broadcast %cst_51 : f32 to vector<16x256xf32>
    %214 = arith.mulf %213, %212 : vector<16x256xf32>
    %cst_52 = arith.constant 2.000000e+00 : f32
    %215 = vector.broadcast %cst_52 : f32 to vector<16x256xf32>
    %216 = arith.select %203, %214, %215 : vector<16x256xi1>, vector<16x256xf32>
    %217 = arith.addf %211, %216 : vector<16x256xf32>
    %218 = arith.mulf %197, %211 : vector<16x256xf32>
    %219 = tpu.reciprocal %217 {approx = true} : vector<16x256xf32> -> vector<16x256xf32>
    %220 = arith.mulf %218, %219 : vector<16x256xf32>
    %c0_53 = arith.constant 0 : index
    %c0_54 = arith.constant 0 : index
    %221 = vector.load %arg9[%c0_53, %c0_54] : memref<4x16xbf16, #tpu.memory_space<vmem>>, vector<4x16xbf16>
    %222 = arith.truncf %220 : vector<16x256xf32> to vector<16x256xbf16>
    %cst_55 = arith.constant dense<0.000000e+00> : vector<4x256xf32>
    %223 = tpu.matmul %221, %222, %cst_55 {dimension_numbers = #tpu.dot_dimension_numbers<[1], [0], [0], [1], [0, 0, 1, 1], [], []>} : vector<4x16xbf16>, vector<16x256xbf16>, vector<4x256xf32> -> vector<4x256xf32>
    %c0_56 = arith.constant 0 : index
    %c0_57 = arith.constant 0 : index
    %224 = vector.load %arg10[%c0_56, %c0_57] : memref<4x1xf32, #tpu.memory_space<vmem>>, vector<4x1xf32>
    %225 = vector.broadcast %224 : vector<4x1xf32> to vector<4x256xf32>
    %226 = arith.addf %223, %225 : vector<4x256xf32>
    %c0_58 = arith.constant 0 : index
    %c0_59 = arith.constant 0 : index
    %227 = vector.load %arg11[%c0_58, %c0_59] : memref<4x1xf32, #tpu.memory_space<vmem>>, vector<4x1xf32>
    %228 = vector.broadcast %227 : vector<4x1xf32> to vector<4x256xf32>
    %229 = arith.mulf %228, %226 : vector<4x256xf32>
    %230 = arith.addf %1, %229 : vector<4x256xf32>
    %c0_60 = arith.constant 0 : index
    %c0_61 = arith.constant 0 : index
    %c0_62 = arith.constant 0 : index
    %231 = vector.load %arg12[%c0_60, %c0_61, %c0_62] : memref<1x4x256xf32, #tpu.memory_space<vmem>>, vector<1x4x256xf32>
    %232 = vector.shape_cast %231 : vector<1x4x256xf32> to vector<4x256xf32>
    %233 = vector.shape_cast %230 : vector<4x256xf32> to vector<1x4x256xf32>
    tpu.vector_store %arg12[%c0_60, %c0_61, %c0_62], %233 {strides = array<i32>} : memref<1x4x256xf32, #tpu.memory_space<vmem>>, vector<1x4x256xf32>,
    return
  }
  func.func @transform_0(%arg0: i32) -> (i32, i32, i32) {
    %c0_i32 = arith.constant 0 : i32
    %c0_i32_0 = arith.constant 0 : i32
    %c0_i32_1 = arith.constant 0 : i32
    return %arg0, %c0_i32, %c0_i32_0 : i32, i32, i32
  }
  func.func @transform_1(%arg0: i32) -> (i32, i32) {
    %c0_i32 = arith.constant 0 : i32
    %c0_i32_0 = arith.constant 0 : i32
    %c0_i32_1 = arith.constant 0 : i32
    return %c0_i32, %c0_i32_0 : i32, i32
  }
  func.func @transform_2(%arg0: i32) -> (i32, i32) {
    %c0_i32 = arith.constant 0 : i32
    %c0_i32_0 = arith.constant 0 : i32
    %c0_i32_1 = arith.constant 0 : i32
    return %c0_i32, %c0_i32_0 : i32, i32
  }
  func.func @transform_3(%arg0: i32) -> (i32, i32) {
    %c0_i32 = arith.constant 0 : i32
    %c0_i32_0 = arith.constant 0 : i32
    %c0_i32_1 = arith.constant 0 : i32
    return %c0_i32, %c0_i32_0 : i32, i32
  }
  func.func @transform_4(%arg0: i32) -> (i32, i32) {
    %c0_i32 = arith.constant 0 : i32
    %c0_i32_0 = arith.constant 0 : i32
    %c0_i32_1 = arith.constant 0 : i32
    return %c0_i32, %c0_i32_0 : i32, i32
  }
  func.func @transform_5(%arg0: i32) -> (i32, i32) {
    %c0_i32 = arith.constant 0 : i32
    %c0_i32_0 = arith.constant 0 : i32
    %c0_i32_1 = arith.constant 0 : i32
    return %c0_i32, %c0_i32_0 : i32, i32
  }
  func.func @transform_6(%arg0: i32) -> (i32, i32) {
    %c0_i32 = arith.constant 0 : i32
    %c0_i32_0 = arith.constant 0 : i32
    %c0_i32_1 = arith.constant 0 : i32
    return %c0_i32, %c0_i32_0 : i32, i32
  }
  func.func @transform_7(%arg0: i32) -> (i32, i32) {
    %c0_i32 = arith.constant 0 : i32
    %c0_i32_0 = arith.constant 0 : i32
    %c0_i32_1 = arith.constant 0 : i32
    return %c0_i32, %c0_i32_0 : i32, i32
  }
  func.func @transform_8(%arg0: i32) -> (i32, i32) {
    %c0_i32 = arith.constant 0 : i32
    %c0_i32_0 = arith.constant 0 : i32
    %c0_i32_1 = arith.constant 0 : i32
    return %c0_i32, %c0_i32_0 : i32, i32
  }
  func.func @transform_9(%arg0: i32) -> (i32, i32) {
    %c0_i32 = arith.constant 0 : i32
    %c0_i32_0 = arith.constant 0 : i32
    %c0_i32_1 = arith.constant 0 : i32
    return %c0_i32, %c0_i32_0 : i32, i32
  }
  func.func @transform_10(%arg0: i32) -> (i32, i32) {
    %c0_i32 = arith.constant 0 : i32
    %c0_i32_0 = arith.constant 0 : i32
    %c0_i32_1 = arith.constant 0 : i32
    return %c0_i32, %c0_i32_0 : i32, i32
  }
  func.func @transform_11(%arg0: i32) -> (i32, i32, i32) {
    %c0_i32 = arith.constant 0 : i32
    %c0_i32_0 = arith.constant 0 : i32
    %c0_i32_1 = arith.constant 0 : i32
    return %arg0, %c0_i32, %c0_i32_0 : i32, i32, i32
  }
}

</mosaic_0001>

<bundles_post_ra>
// kernel: tpu_custom_call.1
= control target key start
LH: loop header
LB: loop body
LE: loop exit
PB: predicated region body
PF: predicated region fallthrough
CT: control target
= control target key end

     0   :  { %s2000_s0 = inlined_call_operand.vmem [shape: f32[2,4,256], index: 0, kind: input, shape index: {}]   ;;  %s2001_s1 = inlined_call_operand.vmem [shape: f32[4,25], index: 1, kind: input, shape index: {}]   ;;  %s2002_s2 = inlined_call_operand.vmem [shape: f32[4,1], index: 2, kind: input, shape index: {}]   ;;  %s2003_s3 = inlined_call_operand.vmem [shape: f32[4,4], index: 3, kind: input, shape index: {}]   ;;  %s2004_s4 = inlined_call_operand.vmem [shape: f32[4,1], index: 4, kind: input, shape index: {}]   ;;  %s2005_s5 = inlined_call_operand.vmem [shape: f32[4,1], index: 5, kind: input, shape index: {}]   ;;  %s2006_s6 = inlined_call_operand.vmem [shape: bf16[16,4], index: 6, kind: input, shape index: {}]   ;;  %s2007_s7 = inlined_call_operand.vmem [shape: f32[16,1], index: 7, kind: input, shape index: {}]   ;;  %s2008_s8 = inlined_call_operand.vmem [shape: bf16[4,16], index: 8, kind: input, shape index: {}]   ;;  %s2009_s9 = inlined_call_operand.vmem [shape: f32[4,1], index: 9, kind: input, shape index: {}]   ;;  %s2010_s10 = inlined_call_operand.vmem [shape: f32[4,1], index: 10, kind: input, shape index: {}]   ;;  %s2011_s11 = inlined_call_operand.hbm [shape: f32[2,4,256], index: 11, kind: output, shape index: {}]  }
   0x1   :  { %2012 = sst [smem:[#allocation5_spill]] %s2000_s0 }
   0x2   :  { %16 = vsyncpa [#allocation3], 0 }
   0x3   :  { %18 = vsyncpa [#allocation3 + $0x1], 0  ;;  %s1562_s17 = smov 0   ;;  %s1564_s18 = smov 0  }
   0x4   :  { %s1566_s19 = smov 0   ;;  %s1568_s20 = smov 0  }
   0x5 LB: > { %s1583_s21 = sadd.s32 4294967295, %s1463_s20   ;;  %s1253_s22 = sadd.s32 4294967294, %s1463_s20   ;;  %s1463_s20 = sphi %s1568_s20, %s2019_s20   ;;  %s1459_s19 = sphi %s1566_s19, %s2018_s19   ;;  %s1455_s18 = sphi %s1564_s18, %s2017_s18   ;;  %s1451_s17 = sphi %s1562_s17, %s2016_s17  }
   0x6   : > { %s1587_s23 = sadd.s32 1, %s1463_s20   ;;  %s267_s24 = sadd.s32 1, %s1459_s19 }
   0x7   : > { %s264_s25 = ssub.s32 %s1463_s20, %s1587_s23  ;;  %p277_p0 = scmp.ne.s32.totalorder %s1459_s19, %s1455_s18 }
   0x8   : > { %p265_p1 = scmp.eq.s32.totalorder %s264_s25, 0  ;;  %p278_p2 = scmp.eq.s32.totalorder %s1583_s21, 1 }
   0x9   : > { %p283_p3 = scmp.ne.s32.totalorder %s1455_s18, %s1451_s17  ;;  %p284_p4 = scmp.eq.s32.totalorder %s1253_s22, 1 }
   0xa   : > { %s1598_s26 = scalar_select %p265_p1, %s1459_s19, %s267_s24  }
   0xb   : > { %p1600_p5 = por %p278_p2, %p277_p0  ;;  %p1604_p6 = por %p284_p4, %p283_p3 }
   0xc   : > { %p1256_p7 = scmp.ge.s32.totalorder %s1463_s20, 1  ;;  %p340_p8 = scmp.lt.s32.totalorder %s1463_s20, 3 }
   0xe   : > { %p341_p9 = pnand %p1256_p7, %p340_p8 }
   0xf   : > { %p380_p10 = scmp.lt.s32.totalorder (!%p341_p9), %s1583_s21, 1  ;;  %s2015_s0 = sld [smem:[#allocation5_spill]] (!%p341_p9) }
  0x10   : > { %344 = sbr.rel (%p341_p9) target bundleno = 1106 (0x452), region = 64  ;;  %s1470_s22 = smov (!%p341_p9), 2  }
  0x11   : > { %s1472_s24 = smov (!%p341_p9), 114   ;;  %s1473_s25 = smov (!%p341_p9), 1  }
  0x12   : > { %s1474_s29 = smov (!%p341_p9), 113   ;;  %s1475_s30 = smov (!%p341_p9), 32  }
  0x13   : > { %s1486_s14 = smov (!%p341_p9), 15   ;;  %s1487_s15 = smov (!%p341_p9), 126  }
  0x15   : > { %v1613_v0 = vld [vmem:[%s2001_s1] sm:$0xf]  ;;  %v1465_v1 = vmov 0   ;;  %v1466_v2 = vmov 1   ;;  %s381_s12 = scalar_select %p380_p10, %s1583_s21, 1  ;;  %v1467_v3 = vmov 5   ;;  %v387_v50 = vlaneseq }
  0x16   : > { %1356 = vset.pattern.permute.xlu2 %v1465_v1  ;;  %1358 = vset.pattern.permute.xlu1 %v1466_v2  ;;  %v1468_v5 = vmov 6   ;;  %v1469_v6 = vmov 2   ;;  %v1471_v9 = vmov 7   ;;  %v1476_v18 = vmov 8  }
  0x17   : > { %457 = vperm.xlu2 %1356, %v1613_v0   ;;  %554 = vperm.xlu1 %1358, %v1613_v0   ;;  %s1277_s13 = sshll.u32 %s381_s12, 3  ;;  %v1477_v19 = vmov 3   ;;  %s1478_s12 = smov 16   ;;  %v1479_v22 = vmov 10   ;;  %v1480_v27 = vmov 11   ;;  %v1481_v28 = vmov 13  }
  0x18   : > { %1357 = vset.pattern.permute.xlu0 %v1467_v3  ;;  %s384_s16 = scalar_lea.vmem %s2015_s0, %s1277_s13  ;;  %v1482_v29 = vmov 12   ;;  %v1483_v32 = vmov 17   ;;  %s1484_s13 = smov 127   ;;  %v1485_v35 = vmov 15   ;;  %v1488_v41 = vmov 16  }
  0x19   : > { %v1623_v4 = vld [vmem:[%s384_s16] sm:$0xff]  ;;  %s1489_s16 = smov 14   ;;  %v1491_v47 = vmov 4   ;;  %v1492_v48 = vmov 18   ;;  %v1673_v52 = vand.u32 127, %v387_v50  ;;  %v1493_v56 = vmov 9  }
  0x1a   : > { %416 = vst [vmem:[#allocation1] ss:$2 sm:$0xff] %v1623_v4 }
  0x1b   : > { %v389_v53 = vadd.s32 128, %v1673_v52  ;;  %v1678_v58 = vand.u32 15, %v1673_v52  ;;  %vm425_vm0 = vcmp.lt.s32.totalorder %v1673_v52, 2  ;;  %vm437_vm1 = vcmp.lt.s32.totalorder %v1673_v52, 114 }
  0x1c   : > { %vm524_vm4 = vcmp.lt.s32.totalorder %v1673_v52, 1  ;;  %vm536_vm5 = vcmp.lt.s32.totalorder %v1673_v52, 113  ;;  %vm452_vm8 = vcmp.lt.s32.totalorder %v1673_v52, 32  ;;  %vm466_vm9 = vcmp.lt.s32.totalorder %v1673_v52, 16 }
  0x1d   : > { %v1680_v59 = vand.u32 15, %v389_v53  ;;  %vm440_vm2 = vcmp.ge.s32.totalorder %v1678_v58, 2  ;;  %vm539_vm6 = vcmp.ge.s32.totalorder %v1678_v58, 1  ;;  %vm705_vm10 = vcmp.lt.s32.totalorder %v1673_v52, 127 }
  0x1e   : > { %vm717_vm11 = vcmp.lt.s32.totalorder %v1673_v52, 15  ;;  %vm720_vm12 = vcmp.lt.s32.totalorder %v1678_v58, 15  ;;  %vm799_vm14 = vcmp.lt.s32.totalorder %v1673_v52, 126  ;;  %vm811_vm15 = vcmp.lt.s32.totalorder %v1673_v52, 14 }
  0x1f   : > { %1359 = vset.pattern.permute.xlu2 %v1468_v5  ;;  %1360 = vset.pattern.permute.xlu1 %v1469_v6  ;;  %vm441_vm3 = vcmp.ge.s32.totalorder %v1680_v59, 2  ;;  %v1494_v6 = vmov 21   ;;  %vm540_vm7 = vcmp.ge.s32.totalorder %v1680_v59, 1  ;;  %vm721_vm13 = vcmp.lt.s32.totalorder %v1680_v59, 15 }
  0x20   : > { %566 = vperm.xlu2 %1359, %v1613_v0  }
  0x21   : > { %v417_v7 = vld.sshfl [vmem:[#allocation1] sm:$0xff pattern:$0x75316420]  ;;  %v418_v8 = vld.sshfl [vmem:[#allocation1 + $0x8] sm:$0xff pattern:$0x75316420] }
  0x22   : > { %421 = vrot.lane.b32.xlu0 %v417_v7, %s1470_s22  ;;  %428 = vst [vmem:[#allocation1] ss:$2 sm:$0xff] %v1623_v4 }
  0x28   : > { %1361 = vset.pattern.permute.xlu2 %v1471_v9 }
  0x29   : > { %v429_v10 = vld.sshfl [vmem:[#allocation1] sm:$0xff pattern:$0x75316420]  ;;  %v430_v11 = vld.sshfl [vmem:[#allocation1 + $0x8] sm:$0xff pattern:$0x75316420] }
  0x2a   : > { %423 = vrot.lane.b32.xlu0 %v418_v8, %s1470_s22  ;;  %433 = vrot.lane.b32.xlu1 %v429_v10, %s1472_s24  ;;  %515 = vst [vmem:[#allocation1] ss:$2 sm:$0xff] %v1623_v4  ;;  %s1490_s22 = smov 112  }
  0x31   : > { %v516_v12 = vld.sshfl [vmem:[#allocation1] sm:$0xff pattern:$0x75316420]  ;;  %v517_v13 = vld.sshfl [vmem:[#allocation1 + $0x8] sm:$0xff pattern:$0x75316420] }
  0x32   : > { %470 = vperm.xlu0 %1357, %v1613_v0   ;;  %435 = vrot.lane.b32.xlu1 %v430_v11, %s1472_s24  ;;  %527 = vst [vmem:[#allocation1] ss:$2 sm:$0xff] %v1623_v4  ;;  %s1495_s24 = smov 96  }
  0x33   : > { %520 = vrot.lane.b32.xlu2 %v516_v12, %s1473_s25 }
  0x39   : > { %v528_v14 = vld.sshfl [vmem:[#allocation1] sm:$0xff pattern:$0x75316420]  ;;  %v529_v15 = vld.sshfl [vmem:[#allocation1 + $0x8] sm:$0xff pattern:$0x75316420] }
  0x3a   : > { %621 = vperm.xlu1 %1360, %v1613_v0   ;;  %532 = vrot.lane.b32.xlu0 %v528_v14, %s1474_s29  ;;  %609 = vst [vmem:[#allocation1] ss:$2 sm:$0xff] %v1623_v4 }
  0x3b   : > { %522 = vrot.lane.b32.xlu2 %v517_v13, %s1473_s25  ;;  %1362 = vset.pattern.permute.xlu0 %v1477_v19  ;;  %s377_s25 = sand.u32 1, %s1455_s18  }
  0x41   : > { %v610_v16 = vld.sshfl [vmem:[#allocation1] sm:$0xff pattern:$0x75316420]  ;;  %v611_v17 = vld.sshfl [vmem:[#allocation1 + $0x8] sm:$0xff pattern:$0x75316420] }
  0x42   : > { %534 = vrot.lane.b32.xlu1 %v529_v15, %s1474_s29  ;;  %614 = vrot.lane.b32.xlu0 %v610_v16, %s1475_s30  ;;  %626 = vst [vmem:[#allocation1] ss:$2 sm:$0xff] %v1623_v4  ;;  %s1257_s29 = sshll.u32 %s377_s25, 3 }
  0x43   : > { %638 = vperm.xlu2 %1361, %v1613_v0   ;;  %1363 = vset.pattern.permute.xlu1 %v1476_v18 }
  0x49   : > { %v628_v20 = vld.sshfl [vmem:[#allocation1 + $0x8] sm:$0xff pattern:$0x75316420]  ;;  %v627_v21 = vld.sshfl [vmem:[#allocation1] sm:$0xff pattern:$0x75316420] }
  0x4a   : > { %616 = vrot.lane.b32.xlu1 %v611_v17, %s1475_s30  ;;  %633 = vrot.lane.b32.xlu0 %v628_v20, %s1478_s12  ;;  %649 = vst [vmem:[#allocation1] ss:$2 sm:$0xff] %v1623_v4 }
  0x4b   : > { %631 = vrot.lane.b32.xlu2 %v627_v21, %s1478_s12 }
  0x4c   : > { %1364 = vset.pattern.permute.xlu2 %v1479_v22 }
  0x51   : > { %v1640_v23 = vld.sshfl [vmem:[#allocation1] sm:$0xff pattern:$0x75316420]  ;;  %v1642_v24 = vld.sshfl [vmem:[#allocation1 + $0x8] sm:$0xff pattern:$0x75316420] }
  0x52   : > { %658 = vst [vmem:[#allocation1] ss:$2 sm:$0xff] %v1623_v4  ;;  %747 = vperm.xlu1 %1363, %v1613_v0   ;;  %735 = vperm.xlu0 %1362, %v1613_v0  }
  0x53   : > { %478 = vperm.xlu2 %1364, %v1613_v0  }
  0x59   : > { %v659_v25 = vld.sshfl [vmem:[#allocation1] sm:$0xff pattern:$0x75316420]  ;;  %v660_v26 = vld.sshfl [vmem:[#allocation1 + $0x8] sm:$0xff pattern:$0x75316420] }
  0x5a   : > { %677 = vst [vmem:[#allocation1] ss:$2 sm:$0xff] %v1623_v4  ;;  %1365 = vset.pattern.permute.xlu1 %v1480_v27  ;;  %1367 = vset.pattern.permute.xlu0 %v1481_v28 }
  0x5b   : > { %574 = vperm.xlu1 %1365, %v1613_v0   ;;  %1366 = vset.pattern.permute.xlu2 %v1482_v29 }
  0x5c   : > { %646 = vperm.xlu2 %1366, %v1613_v0  }
  0x61   : > { %v1651_v30 = vld.sshfl [vmem:[#allocation1] sm:$0xff pattern:$0x75316420]  ;;  %v1653_v31 = vld.sshfl [vmem:[#allocation1 + $0x8] sm:$0xff pattern:$0x75316420] }
  0x62   : > { %696 = vst [vmem:[#allocation1] ss:$2 sm:$0xff] %v1623_v4 }
  0x63   : > { %1370 = vset.pattern.permute.xlu1 %v1483_v32 }
  0x64   : > { %1368 = vset.pattern.permute.xlu2 %v1485_v35 }
  0x69   : > { %v698_v33 = vld.sshfl [vmem:[#allocation1 + $0x8] sm:$0xff pattern:$0x75316420]  ;;  %v697_v34 = vld.sshfl [vmem:[#allocation1] sm:$0xff pattern:$0x75316420] }
  0x6a   : > { %703 = vrot.lane.b32.xlu0 %v698_v33, %s1484_s13  ;;  %708 = vst [vmem:[#allocation1] ss:$2 sm:$0xff] %v1623_v4  ;;  %701 = vrot.lane.b32.xlu2 %v697_v34, %s1484_s13  ;;  %s1421_s13 = scalar_lea.hbm %s2011_s11, 16 }
  0x71   : > { %v709_v36 = vld.sshfl [vmem:[#allocation1] sm:$0xff pattern:$0x75316420]  ;;  %v710_v37 = vld.sshfl [vmem:[#allocation1 + $0x8] sm:$0xff pattern:$0x75316420]  ;;  %v1659_v40 = vpop.permute.xlu2 %457 }
  0x72   : > { %755 = vperm.xlu0 %1367, %v1613_v0   ;;  %713 = vrot.lane.b32.xlu1 %v709_v36, %s1486_s14  ;;  %790 = vst [vmem:[#allocation1] ss:$2 sm:$0xff] %v1623_v4 }
  0x73   : > { %715 = vrot.lane.b32.xlu2 %v710_v37, %s1486_s14 }
  0x79   : > { %v791_v38 = vld.sshfl [vmem:[#allocation1] sm:$0xff pattern:$0x75316420]  ;;  %v792_v39 = vld.sshfl [vmem:[#allocation1 + $0x8] sm:$0xff pattern:$0x75316420] }
  0x7a   : > { %795 = vrot.lane.b32.xlu0 %v791_v38, %s1487_s15  ;;  %797 = vrot.lane.b32.xlu1 %v792_v39, %s1487_s15  ;;  %802 = vst [vmem:[#allocation1] ss:$2 sm:$0xff] %v1623_v4  ;;  %v1663_v44 = vpop.permute.xlu2 %566  ;;  %v1496_v39 = vmov 22   ;;  %s379_s15 = scalar_lea.vmem [#allocation2], %s1257_s29 }
  0x7b   : > { %1369 = vset.pattern.permute.xlu0 %v1488_v41  ;;  %v1497_v41 = vmov 20  }
  0x81   : > { %v804_v42 = vld.sshfl [vmem:[#allocation1 + $0x8] sm:$0xff pattern:$0x75316420]  ;;  %v803_v43 = vld.sshfl [vmem:[#allocation1] sm:$0xff pattern:$0x75316420] }
  0x82   : > { %809 = vrot.lane.b32.xlu0 %v804_v42, %s1489_s16  ;;  %665 = vrot.lane.b32.xlu1 %v660_v26, %s1490_s22 }
  0x83   : > { %807 = vrot.lane.b32.xlu2 %v803_v43, %s1489_s16  ;;  %s1191_s16 = sshll.u32 %s379_s15, 4  ;;  %s1192_s16 = int_to_ptr.vmem [resolvable:$true] %s1191_s16 }
  0x89   : > { %v1668_v46 = vpop.permute.xlu1 %554 }
  0x8a   : > { %663 = vrot.lane.b32.xlu0 %v659_v25, %s1490_s22  ;;  %670 = vperm.xlu1 %1370, %v1613_v0  }
  0x8b   : > { %493 = vperm.xlu2 %1368, %v1613_v0  }
  0x8d   : > { %v521_v45 = vpop.permute.xlu2 %520 }
  0x92   : > { %1372 = vset.pattern.permute.xlu1 %v1491_v47  ;;  %588 = vperm.xlu0 %1369, %v1613_v0  }
  0x93   : > { %1371 = vset.pattern.permute.xlu2 %v1492_v48  ;;  %829 = vperm.xlu1 %1372, %v1613_v0  }
  0x94   : > { %v422_v49 = vpop.permute.xlu0 %421  ;;  %769 = vperm.xlu2 %1371, %v1613_v0  }
  0x95   : > { %v523_v51 = vpop.permute.xlu2 %522 }
  0x96   : > { %v525_v14 = vsel %vm524_vm4, %v521_v45, %v523_v51  ;;  %v526_v15 = vsel %vm524_vm4, %v523_v51, %v521_v45  ;;  %vm900_vm4 = vcmask 1043456  }
  0x9a   : > { %1375 = vset.pattern.permute.xlu0 %v1494_v6 }
  0x9b   : > { %1376 = vset.pattern.permute.xlu1 %v1496_v39 }
  0x9c   : > { %v424_v54 = vpop.permute.xlu0 %423  ;;  %v434_v55 = vpop.permute.xlu1 %433  ;;  %1373 = vset.pattern.permute.xlu2 %v1493_v56 }
  0x9d   : > { %v639_v57 = vpop.permute.xlu2 %638  ;;  %841 = vperm.xlu2 %1373, %v1613_v0   ;;  %v426_v62 = vsel %vm425_vm0, %v422_v49, %v424_v54  ;;  %v427_v63 = vsel %vm425_vm0, %v424_v54, %v422_v49  ;;  %vm489_vm0 = vcmp.lt.s32.totalorder %v1673_v52, 112 }
  0xa4   : > { %v1686_v60 = vpop.permute.xlu0 %470  ;;  %v436_v61 = vpop.permute.xlu1 %435 }
  0xa5   : > { %v438_v2 = vsel %vm437_vm1, %v434_v55, %v436_v61  ;;  %v439_v3 = vsel %vm437_vm1, %v436_v61, %v434_v55  ;;  %v632_v5 = vpop.permute.xlu2 %631  ;;  %1374 = vset.pattern.permute.xlu2 %v1497_v41  ;;  %vm814_vm1 = vcmp.lt.s32.totalorder %v1678_v58, 14 }
  0xa6   : > { %v446_v7 = vsel %vm440_vm2, %v427_v63, %v438_v2  ;;  %v447_v8 = vsel %vm441_vm3, %v426_v62, %v439_v3  ;;  %vm815_vm2 = vcmp.lt.s32.totalorder %v1680_v59, 14  ;;  %vm504_vm3 = vcmp.lt.s32.totalorder %v1673_v52, 96 }
  0xa7   : > { %448 = vrot.lane.b32.xlu1 %v446_v7, %s1475_s30  ;;  %462 = vrot.lane.b32.xlu0 %v446_v7, %s1478_s12 }
  0xa8   : > { %450 = vrot.lane.b32.xlu2 %v447_v8, %s1475_s30 }
  0xac   : > { %v622_v9 = vpop.permute.xlu1 %621  ;;  %v533_v10 = vpop.permute.xlu0 %532 }
  0xad   : > { %v479_v11 = vpop.permute.xlu2 %478 }
  0xae   : > { %v1691_v12 = vmul.f32 %v479_v11, %v446_v7  ;;  %v1693_v13 = vmul.f32 %v479_v11, %v447_v8 }
  0xaf   : > { %464 = vrot.lane.b32.xlu1 %v447_v8, %s1478_s12  ;;  %500 = vrot.lane.b32.xlu0 %v446_v7, %s1495_s24 }
  0xb0   : > { %487 = vrot.lane.b32.xlu2 %v447_v8, %s1490_s22 }
  0xb4   : > { %v535_v16 = vpop.permute.xlu1 %534  ;;  %v615_v17 = vpop.permute.xlu0 %614 }
  0xb5   : > { %v537_v18 = vsel %vm536_vm5, %v533_v10, %v535_v16  ;;  %v538_v19 = vsel %vm536_vm5, %v535_v16, %v533_v10  ;;  %vm914_vm5 = vcmask 31744  }
  0xb6   : > { %v545_v20 = vsel %vm539_vm6, %v526_v15, %v537_v18  ;;  %v546_v21 = vsel %vm540_vm7, %v525_v14, %v538_v19  ;;  %v647_v22 = vpop.permute.xlu2 %646  ;;  %v1500_v14 = vmov 19  }
  0xb7   : > { %485 = vrot.lane.b32.xlu1 %v446_v7, %s1490_s22  ;;  %549 = vrot.lane.b32.xlu0 %v546_v21, %s1475_s30  ;;  %v654_v27 = vmul.f32 %v1640_v23, %v647_v22  ;;  %v655_v28 = vmul.f32 %v1642_v24, %v647_v22 }
  0xb8   : > { %547 = vrot.lane.b32.xlu2 %v545_v20, %s1475_s30 }
  0xbc   : > { %v617_v25 = vpop.permute.xlu1 %616  ;;  %v634_v26 = vpop.permute.xlu0 %633 }
  0xbd   : > { %v618_v29 = vsel %vm452_vm8, %v615_v17, %v617_v25  ;;  %v619_v32 = vsel %vm452_vm8, %v617_v25, %v615_v17  ;;  %v635_v33 = vsel %vm466_vm9, %v632_v5, %v634_v26  ;;  %v636_v34 = vsel %vm466_vm9, %v634_v26, %v632_v5 }
  0xbe   : > { %v624_v35 = vmul.f32 %v622_v9, %v619_v32  ;;  %v625_v36 = vmul.f32 %v622_v9, %v618_v29  ;;  %v641_v37 = vmul.f32 %v639_v57, %v636_v34  ;;  %v642_v38 = vmul.f32 %v639_v57, %v635_v33 }
  0xbf   : > { %502 = vrot.lane.b32.xlu1 %v447_v8, %s1495_s24  ;;  %597 = vrot.lane.b32.xlu0 %v546_v21, %s1495_s24  ;;  %v1498_v5 = vmov 14   ;;  %v1499_v8 = vmov 23  }
  0xc0   : > { %v643_v23 = vadd.f32 %v641_v37, %v624_v35  ;;  %v644_v24 = vadd.f32 %v642_v38, %v625_v36  ;;  %561 = vrot.lane.b32.xlu2 %v546_v21, %s1478_s12 }
  0xc2   : > { %v1720_v42 = vadd.f32 %v654_v27, %v643_v23  ;;  %v1722_v43 = vadd.f32 %v655_v28, %v644_v24 }
  0xc4   : > { %v1724_v45 = vpop.permute.xlu1 %747  ;;  %v702_v47 = vpop.permute.xlu2 %701 }
  0xc5   : > { %v1736_v51 = vpop.permute.xlu0 %735 }
  0xc7   : > { %559 = vrot.lane.b32.xlu1 %v545_v20, %s1478_s12  ;;  %602 = vperm.xlu0 %1375, %v1613_v0  }
  0xc8   : > { %583 = vrot.lane.b32.xlu2 %v546_v21, %s1490_s22 }
  0xcd   : > { %v575_v48 = vpop.permute.xlu1 %574  ;;  %v716_v53 = vpop.permute.xlu2 %715 }
  0xce   : > { %v1729_v49 = vmul.f32 %v575_v48, %v545_v20  ;;  %v1731_v50 = vmul.f32 %v575_v48, %v546_v21  ;;  %v1501_v21 = vmov 24  }
  0xcf   : > { %581 = vrot.lane.b32.xlu1 %v545_v20, %s1490_s22  ;;  %1382 = vset.pattern.permute.xlu0 %v1465_v1 }
  0xd0   : > { %595 = vrot.lane.b32.xlu2 %v545_v20, %s1495_s24 }
  0xd7   : > { %682 = vrot.lane.b32.xlu1 %v1651_v30, %s1495_s24 }
  0xd8   : > { %684 = vrot.lane.b32.xlu2 %v1653_v31, %s1495_s24 }
  0xdc   : > { %v704_v54 = vpop.permute.xlu0 %703 }
  0xdd   : > { %v808_v55 = vpop.permute.xlu2 %807  ;;  %v706_v56 = vsel %vm705_vm10, %v702_v47, %v704_v54  ;;  %v707_v57 = vsel %vm705_vm10, %v704_v54, %v702_v47 }
  0xdf   : > { %689 = vperm.xlu1 %1376, %v1613_v0  }
  0xe0   : > { %508 = vperm.xlu2 %1374, %v1613_v0  }
  0xe4   : > { %v756_v30 = vpop.permute.xlu0 %755  ;;  %v714_v61 = vpop.permute.xlu1 %713 }
  0xe5   : > { %v718_v62 = vsel %vm717_vm11, %v714_v61, %v716_v53  ;;  %v719_v31 = vsel %vm717_vm11, %v716_v53, %v714_v61  ;;  %v1748_v63 = vpop.permute.xlu2 %493 }
  0xe6   : > { %v726_v2 = vsel %vm720_vm12, %v706_v56, %v719_v31  ;;  %v727_v3 = vsel %vm721_vm13, %v707_v57, %v718_v62 }
  0xe7   : > { %1378 = vset.pattern.permute.xlu1 %v1498_v5  ;;  %740 = vrot.lane.b32.xlu0 %v726_v2, %s1478_s12  ;;  %v1751_v6 = vmul.f32 %v756_v30, %v726_v2  ;;  %v1753_v7 = vmul.f32 %v756_v30, %v727_v3 }
  0xe8   : > { %1377 = vset.pattern.permute.xlu2 %v1499_v8  ;;  %849 = vperm.xlu1 %1378, %v1613_v0  }
  0xe9   : > { %783 = vperm.xlu2 %1377, %v1613_v0  }
  0xec   : > { %v796_v9 = vpop.permute.xlu0 %795  ;;  %v798_v10 = vpop.permute.xlu1 %797 }
  0xed   : > { %v800_v18 = vsel %vm799_vm14, %v796_v9, %v798_v10  ;;  %v801_v22 = vsel %vm799_vm14, %v798_v10, %v796_v9  ;;  %vm1132_vm14 = vcmask 130048  }
  0xee   : > { %v1757_v11 = vpop.permute.xlu2 %769 }
  0xef   : > { %764 = vrot.lane.b32.xlu0 %v727_v3, %s1490_s22 }
  0xf0   : > { %1379 = vset.pattern.permute.xlu1 %v1500_v14 }
  0xf1   : > { %730 = vrot.lane.b32.xlu2 %v727_v3, %s1475_s30  ;;  %863 = vperm.xlu1 %1379, %v1613_v0  }
  0xf2   : > { %1381 = vset.pattern.permute.xlu2 %v1465_v1 }
  0xf4   : > { %v810_v15 = vpop.permute.xlu0 %809  ;;  %v666_v16 = vpop.permute.xlu1 %665 }
  0xf5   : > { %v813_v1 = vsel %vm811_vm15, %v810_v15, %v808_v55  ;;  %v812_v25 = vsel %vm811_vm15, %v808_v55, %v810_v15 }
  0xf6   : > { %v1777_v28 = vsel %vm814_vm1, %v800_v18, %v813_v1  ;;  %v1781_v58 = vsel %vm815_vm2, %v801_v22, %v812_v25 }
  0xf7   : > { %776 = vrot.lane.b32.xlu0 %v726_v2, %s1495_s24  ;;  %v1766_v17 = vpop.permute.xlu2 %841 }
  0xf9   : > { %762 = vrot.lane.b32.xlu2 %v726_v2, %s1490_s22  ;;  %728 = vrot.lane.b32.xlu1 %v726_v2, %s1475_s30 }
  0xfa   : > { %1380 = vset.pattern.permute.xlu1 %v1501_v21 }
  0xfc   : > { %v664_v19 = vpop.permute.xlu0 %663  ;;  %v671_v20 = vpop.permute.xlu1 %670 }
  0xfd   : > { %v667_v26 = vsel %vm489_vm0, %v664_v19, %v666_v16  ;;  %v668_v27 = vsel %vm489_vm0, %v666_v16, %v664_v19 }
  0xfe   : > { %v673_v29 = vmul.f32 %v671_v20, %v667_v26  ;;  %v674_v32 = vmul.f32 %v671_v20, %v668_v27 }
  0xff   : > { %834 = vrot.lane.b32.xlu0 %v1777_v28, %s1478_s12 }
 0x100   : > { %v1784_v59 = vadd.f32 %v673_v29, %v1720_v42  ;;  %v1787_v33 = vadd.f32 %v674_v32, %v1722_v43  ;;  %v892_v43 = vld [vmem:[%s2002_s2] sm:$0xf] }
 0x101   : > { %824 = vrot.lane.b32.xlu2 %v1781_v58, %s1475_s30  ;;  %742 = vrot.lane.b32.xlu1 %v727_v3, %s1478_s12 }
 0x102   : > { %v451_v34 = vpop.permute.xlu2 %450 }
 0x104   : > { %v1801_v37 = vpop.permute.xlu0 %588 }
 0x105   : > { %v1799_v36 = vpop.permute.xlu1 %829 }
 0x107   : > { %858 = vrot.lane.b32.xlu0 %v1781_v58, %s1490_s22 }
 0x109   : > { %856 = vrot.lane.b32.xlu2 %v1777_v28, %s1490_s22  ;;  %778 = vrot.lane.b32.xlu1 %v727_v3, %s1495_s24 }
 0x10a   : > { %v488_v35 = vpop.permute.xlu2 %487 }
 0x10f   : > { %872 = vrot.lane.b32.xlu0 %v1781_v58, %s1495_s24 }
 0x111   : > { %870 = vrot.lane.b32.xlu2 %v1777_v28, %s1495_s24  ;;  %822 = vrot.lane.b32.xlu1 %v1777_v28, %s1475_s30  ;;  %s1279_s30 = sshll.u32 %s1583_s21, 3  ;;  %s1178_s21 = scalar_lea.sflag [#allocation3], %s377_s25 }
 0x112   : > { %v548_v38 = vpop.permute.xlu2 %547  ;;  %s1189_s14 = scalar_lea.hbm %s2011_s11, %s1279_s30 }
 0x113   : > { %s1193_s22 = sshll.u32 %s1189_s14, 4  ;;  %s1194_s22 = int_to_ptr.hbm [resolvable:$true] %s1193_s22 }
 0x114   : > { %s1415_s24 = sshra.s32 %s1194_s22, 4  ;;  %s1416_s24 = int_to_ptr.hbm [resolvable:$true] %s1415_s24 }
 0x115   : > { %s1417_s30 = scalar_lea.hbm %s1416_s24, 8  ;;  %p1422_p0 = scmp.lt.s32.totalorder %s1416_s24, %s2011_s11 }
 0x116   : > { %p1418_p11 = scmp.ne.s32.totalorder %s1416_s24, %s1417_s30  ;;  %p1423_p1 = scmp.lt.s32.totalorder %s1421_s13, %s1417_s30 }
 0x118   : > { %p1419_p12 = pnand %p1418_p11, %p1600_p5  ;;  %p1424_p2 = por %p1423_p1, %p1422_p0 }
 0x119   : > { %v449_v23 = vpop.permute.xlu1 %448  ;;  %836 = vrot.lane.b32.xlu1 %v1781_v58, %s1478_s12  ;;  %v463_v41 = vpop.permute.xlu0 %462  ;;  %895 = vperm.xlu2 %1381, %v892_v43  }
 0x11a   : > { %v453_v24 = vsel %vm452_vm8, %v449_v23, %v451_v34  ;;  %v454_v39 = vsel %vm452_vm8, %v451_v34, %v449_v23  ;;  %v562_v42 = vpop.permute.xlu2 %561  ;;  %p1420_p13 = pneg %p1419_p12 }
 0x11b   : > { %v460_v55 = vmul.f32 %v1659_v40, %v454_v39  ;;  %v461_v56 = vmul.f32 %v1659_v40, %v453_v24 }
 0x11c   : > { %p1425_p3 = pnand %p1424_p2, %p1420_p13 }
 0x121   : > { %v465_v47 = vpop.permute.xlu1 %464  ;;  %877 = vperm.xlu1 %1380, %v1613_v0   ;;  %v501_v61 = vpop.permute.xlu0 %500 }
 0x122   : > { %v467_v48 = vsel %vm466_vm9, %v463_v41, %v465_v47  ;;  %v468_v53 = vsel %vm466_vm9, %v465_v47, %v463_v41  ;;  %v584_v54 = vpop.permute.xlu2 %583 }
 0x123   : > { %v473_v57 = vmul.f32 %v1686_v60, %v468_v53  ;;  %v474_v30 = vmul.f32 %v1686_v60, %v467_v48 }
 0x125   : > { %v475_v62 = vadd.f32 %v473_v57, %v460_v55  ;;  %v476_v31 = vadd.f32 %v474_v30, %v461_v56 }
 0x127   : > { %v483_v0 = vadd.f32 %v1691_v12, %v475_v62  ;;  %v484_v2 = vadd.f32 %v1693_v13, %v476_v31 }
 0x129   : > { %v486_v3 = vpop.permute.xlu1 %485  ;;  %v550_v15 = vpop.permute.xlu0 %549 }
 0x12a   : > { %v490_v5 = vsel %vm489_vm0, %v486_v3, %v488_v35  ;;  %v491_v8 = vsel %vm489_vm0, %v488_v35, %v486_v3  ;;  %v596_v9 = vpop.permute.xlu2 %595  ;;  %v551_v1 = vsel %vm452_vm8, %v548_v38, %v550_v15  ;;  %v552_v19 = vsel %vm452_vm8, %v550_v15, %v548_v38 }
 0x12b   : > { %v496_v40 = vmul.f32 %v1748_v63, %v490_v5  ;;  %v497_v10 = vmul.f32 %v1748_v63, %v491_v8  ;;  %v557_v21 = vmul.f32 %v1668_v46, %v552_v19  ;;  %v558_v22 = vmul.f32 %v1668_v46, %v551_v1 }
 0x12d   : > { %v498_v60 = vadd.f32 %v496_v40, %v483_v0  ;;  %v499_v14 = vadd.f32 %v497_v10, %v484_v2 }
 0x131   : > { %v503_v12 = vpop.permute.xlu1 %502  ;;  %v598_v63 = vpop.permute.xlu0 %597 }
 0x132   : > { %v505_v13 = vsel %vm504_vm3, %v501_v61, %v503_v12  ;;  %v506_v16 = vsel %vm504_vm3, %v503_v12, %v501_v61  ;;  %v685_v18 = vpop.permute.xlu2 %684  ;;  %v599_v55 = vsel %vm504_vm3, %v596_v9, %v598_v63 }
 0x139   : > { %v560_v20 = vpop.permute.xlu1 %559  ;;  %v603_v47 = vpop.permute.xlu0 %602 }
 0x13a   : > { %v563_v25 = vsel %vm466_vm9, %v560_v20, %v562_v42  ;;  %v564_v26 = vsel %vm466_vm9, %v562_v42, %v560_v20  ;;  %v509_v27 = vpop.permute.xlu2 %508  ;;  %v605_v56 = vmul.f32 %v603_v47, %v599_v55 }
 0x13b   : > { %v569_v29 = vmul.f32 %v1663_v44, %v564_v26  ;;  %v570_v32 = vmul.f32 %v1663_v44, %v563_v25  ;;  %v511_v34 = vmul.f32 %v509_v27, %v505_v13  ;;  %v512_v35 = vmul.f32 %v509_v27, %v506_v16 }
 0x13d   : > { %v571_v38 = vadd.f32 %v569_v29, %v557_v21  ;;  %v572_v23 = vadd.f32 %v570_v32, %v558_v22  ;;  %v513_v24 = vadd.f32 %v511_v34, %v498_v60  ;;  %v514_v39 = vadd.f32 %v512_v35, %v499_v14 }
 0x13f   : > { %v579_v41 = vadd.f32 %v1729_v49, %v571_v38  ;;  %v580_v46 = vadd.f32 %v1731_v50, %v572_v23  ;;  %v600_v49 = vsel %vm504_vm3, %v598_v63, %v596_v9 }
 0x140   : > { %v606_v50 = vmul.f32 %v603_v47, %v600_v49 }
 0x141   : > { %v582_v43 = vpop.permute.xlu1 %581 }
 0x142   : > { %v585_v42 = vsel %vm489_vm0, %v582_v43, %v584_v54  ;;  %v586_v48 = vsel %vm489_vm0, %v584_v54, %v582_v43 }
 0x143   : > { %v591_v44 = vmul.f32 %v1801_v37, %v585_v42  ;;  %v592_v53 = vmul.f32 %v1801_v37, %v586_v48  ;;  %v784_v60 = vpop.permute.xlu2 %783 }
 0x145   : > { %v593_v57 = vadd.f32 %v591_v44, %v579_v41  ;;  %v594_v30 = vadd.f32 %v592_v53, %v580_v46 }
 0x147   : > { %v607_v61 = vadd.f32 %v605_v56, %v593_v57  ;;  %v608_v62 = vadd.f32 %v606_v50, %v594_v30 }
 0x149   : > { %v683_v31 = vpop.permute.xlu1 %682  ;;  %v884_v0 = vadd.f32 %v607_v61, %v513_v24  ;;  %v885_v2 = vadd.f32 %v608_v62, %v514_v39 }
 0x14a   : > { %v686_v54 = vsel %vm504_vm3, %v683_v31, %v685_v18  ;;  %v687_v37 = vsel %vm504_vm3, %v685_v18, %v683_v31 }
 0x14b   : > { %v731_v12 = vpop.permute.xlu2 %730 }
 0x151   : > { %v690_v3 = vpop.permute.xlu1 %689 }
 0x152   : > { %v692_v5 = vmul.f32 %v690_v3, %v686_v54  ;;  %v693_v8 = vmul.f32 %v690_v3, %v687_v37 }
 0x153   : > { %v763_v1 = vpop.permute.xlu2 %762 }
 0x154   : > { %v694_v9 = vadd.f32 %v692_v5, %v1784_v59  ;;  %v695_v40 = vadd.f32 %v693_v8, %v1787_v33 }
 0x159   : > { %v741_v14 = vpop.permute.xlu0 %740 }
 0x15a   : > { %v850_v10 = vpop.permute.xlu1 %849 }
 0x15b   : > { %v825_v23 = vpop.permute.xlu2 %824  ;;  %v852_v8 = vmul.f32 %v850_v10, %v1777_v28 }
 0x161   : > { %v765_v13 = vpop.permute.xlu0 %764 }
 0x162   : > { %v766_v32 = vsel %vm489_vm0, %v763_v1, %v765_v13  ;;  %v767_v34 = vsel %vm489_vm0, %v765_v13, %v763_v1 }
 0x163   : > { %v864_v15 = vpop.permute.xlu1 %863  ;;  %v772_v24 = vmul.f32 %v1757_v11, %v766_v32 }
 0x169   : > { %v777_v19 = vpop.permute.xlu0 %776 }
 0x16b   : > { %v729_v16 = vpop.permute.xlu1 %728 }
 0x16c   : > { %v732_v63 = vsel %vm452_vm8, %v729_v16, %v731_v12  ;;  %v733_v18 = vsel %vm452_vm8, %v731_v12, %v729_v16 }
 0x16d   : > { %v738_v21 = vmul.f32 %v1736_v51, %v733_v18  ;;  %v739_v22 = vmul.f32 %v1736_v51, %v732_v63  ;;  %v773_v51 = vmul.f32 %v1757_v11, %v767_v34  ;;  %v857_v11 = vpop.permute.xlu2 %856 }
 0x171   : > { %v835_v41 = vpop.permute.xlu0 %834 }
 0x173   : > { %v743_v20 = vpop.permute.xlu1 %742 }
 0x174   : > { %v744_v59 = vsel %vm466_vm9, %v741_v14, %v743_v20  ;;  %v745_v33 = vsel %vm466_vm9, %v743_v20, %v741_v14 }
 0x175   : > { %v750_v25 = vmul.f32 %v1724_v45, %v745_v33  ;;  %v751_v26 = vmul.f32 %v1724_v45, %v744_v59 }
 0x177   : > { %v752_v27 = vadd.f32 %v750_v25, %v738_v21  ;;  %v753_v29 = vadd.f32 %v751_v26, %v739_v22 }
 0x179   : > { %v760_v35 = vadd.f32 %v1751_v6, %v752_v27  ;;  %v761_v38 = vadd.f32 %v1753_v7, %v753_v29  ;;  %v859_v50 = vpop.permute.xlu0 %858 }
 0x17a   : > { %v860_v3 = vsel %vm489_vm0, %v857_v11, %v859_v50  ;;  %v861_v5 = vsel %vm489_vm0, %v859_v50, %v857_v11  ;;  %v979_v11 = vld [vmem:[%s2005_s5] sm:$0xf] }
 0x17b   : > { %v779_v39 = vpop.permute.xlu1 %778  ;;  %v774_v43 = vadd.f32 %v772_v24, %v760_v35  ;;  %v775_v47 = vadd.f32 %v773_v51, %v761_v38  ;;  %v866_v13 = vmul.f32 %v864_v15, %v860_v3 }
 0x17c   : > { %v780_v45 = vsel %vm504_vm3, %v777_v19, %v779_v39  ;;  %v781_v46 = vsel %vm504_vm3, %v779_v39, %v777_v19 }
 0x17d   : > { %v786_v42 = vmul.f32 %v784_v60, %v780_v45  ;;  %v787_v48 = vmul.f32 %v784_v60, %v781_v46 }
 0x17f   : > { %v788_v6 = vadd.f32 %v786_v42, %v774_v43  ;;  %v789_v44 = vadd.f32 %v787_v48, %v775_v47 }
 0x181   : > { %v886_v7 = vadd.f32 %v788_v6, %v694_v9  ;;  %v887_v53 = vadd.f32 %v789_v44, %v695_v40  ;;  %v853_v9 = vmul.f32 %v850_v10, %v1781_v58  ;;  %v871_v40 = vpop.permute.xlu2 %870  ;;  %v873_v12 = vpop.permute.xlu0 %872 }
 0x182   : > { %v875_v19 = vsel %vm504_vm3, %v873_v12, %v871_v40 }
 0x183   : > { %v823_v55 = vpop.permute.xlu1 %822  ;;  %v889_v49 = vadd.f32 %v887_v53, %v885_v2  ;;  %v888_v56 = vadd.f32 %v886_v7, %v884_v0  ;;  %v966_v7 = vld [vmem:[%s2004_s4] sm:$0xf] }
 0x184   : > { %v826_v57 = vsel %vm452_vm8, %v823_v55, %v825_v23  ;;  %v827_v30 = vsel %vm452_vm8, %v825_v23, %v823_v55  ;;  %v913_v23 = vld [vmem:[%s2003_s3] sm:$0xf] }
 0x185   : > { %v832_v54 = vmul.f32 %v1799_v36, %v827_v30  ;;  %v833_v2 = vmul.f32 %v1799_v36, %v826_v57  ;;  %v867_v36 = vmul.f32 %v864_v15, %v861_v5  ;;  %v1000_v57 = vld [vmem:[%s2007_s7] sm:$0xff]  ;;  %v1001_v30 = vld [vmem:[%s2007_s7 + $0x8] sm:$0xff] }
 0x189   : > { %v896_v33 = vpop.permute.xlu2 %895 }
 0x18b   : > { %v837_v61 = vpop.permute.xlu1 %836 }
 0x18c   : > { %v838_v62 = vsel %vm466_vm9, %v835_v41, %v837_v61  ;;  %v839_v31 = vsel %vm466_vm9, %v837_v61, %v835_v41  ;;  %v1126_v61 = vld [vmem:[%s2009_s9] sm:$0xf]  ;;  %vm1020_vm9 = vcmask 1041408  }
 0x18d   : > { %v844_v0 = vmul.f32 %v1766_v17, %v839_v31  ;;  %v845_v37 = vmul.f32 %v1766_v17, %v838_v62  ;;  %v874_v17 = vsel %vm504_vm3, %v871_v40, %v873_v12  ;;  %v1162_v62 = vld [vmem:[%s2010_s10] sm:$0xf] }
 0x18f   : > { %v846_v60 = vadd.f32 %v844_v0, %v832_v54  ;;  %v847_v14 = vadd.f32 %v845_v37, %v833_v2 }
 0x191   : > { %v854_v16 = vadd.f32 %v852_v8, %v846_v60  ;;  %v855_v1 = vadd.f32 %v853_v9, %v847_v14  ;;  %v1278_v60 = vld [vmem:[%s2006_s6] sm:$0xff] }
 0x193   : > { %v878_v63 = vpop.permute.xlu1 %877  ;;  %v868_v18 = vadd.f32 %v866_v13, %v854_v16  ;;  %v869_v20 = vadd.f32 %v867_v36, %v855_v1 }
 0x194   : > { %v880_v28 = vmul.f32 %v878_v63, %v874_v17  ;;  %v881_v59 = vmul.f32 %v878_v63, %v875_v19 }
 0x196   : > { %v882_v58 = vadd.f32 %v880_v28, %v868_v18  ;;  %v883_v10 = vadd.f32 %v881_v59, %v869_v20 }
 0x198   : > { %v891_v21 = vadd.f32 %v889_v49, %v883_v10  ;;  %v890_v22 = vadd.f32 %v888_v56, %v882_v58 }
 0x19a   : > { %v898_v15 = vadd.f32 %v896_v33, %v890_v22  ;;  %v899_v25 = vadd.f32 %v896_v33, %v891_v21 }
 0x19c   : > { %v901_v26 = vsel %vm900_vm4, %v898_v15, 0.0  ;;  %v902_v27 = vsel %vm900_vm4, %v899_v25, 0.0  ;;  %v906_v29 = vmul.f32 %v898_v15, %v898_v15  ;;  %v907_v52 = vmul.f32 %v899_v25, %v899_v25 }
 0x19d   : > { %v903_v32 = vadd.f32 %v902_v27, %v901_v26 }
 0x19e   : > { %v908_v34 = vsel %vm900_vm4, %v906_v29, 0.0  ;;  %v909_v35 = vsel %vm900_vm4, %v907_v52, 0.0 }
 0x19f   : > { %904 = vadd.xlane.f32.xlu0 %v903_v32  ;;  %v910_v38 = vadd.f32 %v909_v35, %v908_v34 }
 0x1a1   : > { %911 = vadd.xlane.f32.xlu1 %v910_v38 }
 0x212   : > { %v905_v24 = vpop.xlane.xlu0 %904 }
 0x213   : > { %1260 = vmatpush.msk.msra.mxu0 %vm900_vm4, %v905_v24 }
 0x214   : > { %v912_v51 = vpop.xlane.xlu1 %911  ;;  %1261 = vmatmul.msk.f32.vlgmr.msra.gmra.mxu0 %vm914_vm5, %v913_v23 }
 0x215   : > { %1262 = vmatpush.msk.msra.mxu1 %vm900_vm4, %v912_v51 }
 0x216   : > { %1263 = vmatmul.msk.f32.vlgmr.msra.gmra.mxu1 %vm914_vm5, %v913_v23 }
 0x291   : > { %v938_v39 = vpop.f32.mrf.mxu0 }
 0x292   : > { %v964_v41 = vmul.f32 %v938_v39, %v938_v39 }
 0x293   : > { %v961_v45 = vpop.f32.mrf.mxu1 }
 0x294   : > { %v965_v46 = vsub.f32 %v961_v45, %v964_v41 }
 0x296   : > { %v967_v43 = vadd.f32 1e-05, %v965_v46 }
 0x298   : > { %1383 = vrsqrt.f32 %v967_v43  ;;  %vm974_vm7 = vweird.f32 %v967_v43 }
 0x29e   : > { %v1384_v47 = vpop.eup %1383 }
 0x29f   : > { %v969_v42 = vmul.f32 %v1384_v47, %v967_v43  ;;  %vm975_vm6 = vweird.f32 %v1384_v47 }
 0x2a0   : > { %vm976_vm8 = vmor %vm974_vm7, %vm975_vm6 }
 0x2a1   : > { %v970_v48 = vmul.f32 %v1384_v47, %v969_v42 }
 0x2a3   : > { %v971_v6 = vmul.f32 0.5, %v970_v48 }
 0x2a5   : > { %v972_v44 = vsub.f32 1.5, %v971_v6 }
 0x2a7   : > { %v973_v53 = vmul.f32 %v1384_v47, %v972_v44 }
 0x2a9   : > { %v977_v55 = vsel %vm976_vm8, %v1384_v47, %v973_v53 }
 0x2aa   : > { %v978_v49 = vmul.f32 %v977_v55, %v966_v7 }
 0x2ac   : > { %984 = vperm.xlu2 %1381, %v978_v49   ;;  %v980_v56 = vmul.f32 %v978_v49, %v938_v39 }
 0x2ae   : > { %v981_v50 = vsub.f32 %v979_v11, %v980_v56 }
 0x2b4   : > { %991 = vperm.xlu2 %1381, %v981_v50  }
 0x2bc   : > { %1004 = vperm.xlu2 %1381, %v1000_v57  }
 0x2c4   : > { %1009 = vperm.xlu2 %1381, %v1001_v30  }
 0x2cc   : > { %1129 = vperm.xlu2 %1381, %v1126_v61  }
 0x2d4   : > { %1165 = vperm.xlu2 %1381, %v1162_v62  }
 0x306   : > { %v985_v31 = vpop.permute.xlu2 %984 }
 0x307   : > { %v987_v54 = vmul.f32 %v985_v31, %v898_v15  ;;  %v988_v2 = vmul.f32 %v985_v31, %v899_v25 }
 0x30e   : > { %v992_v0 = vpop.permute.xlu2 %991 }
 0x30f   : > { %v994_v37 = vadd.f32 %v992_v0, %v987_v54  ;;  %v995_v3 = vadd.f32 %v992_v0, %v988_v2 }
 0x311   : > { %v998_v5 = vpack.c.bf16 %v994_v37, %v994_v37  ;;  %v999_v8 = vpack.c.bf16 %v995_v3, %v995_v3 }
 0x313   : > { %v1022_v9 = vsel %vm1020_vm9, %v998_v5, 0  ;;  %v1025_v40 = vsel %vm1020_vm9, %v999_v8, 0 }
 0x314   : > { %1034 = vmatpush.bf16.msra.mxu2 %v1022_v9  ;;  %1048 = vmatpush.bf16.msra.mxu3 %v1025_v40 }
 0x316   : > { %v1005_v14 = vpop.permute.xlu2 %1004 }
 0x317   : > { %1268 = vmatmul.msk.bf16.vlgmr.msra.gmra.mxu2 %vm914_vm5, %v1278_v60  ;;  %1269 = vmatmul.msk.bf16.vlgmr.msra.gmra.mxu3 %vm914_vm5, %v1278_v60 }
 0x31e   : > { %v1010_v18 = vpop.permute.xlu2 %1009 }
 0x39a   : > { %v1036_v12 = vpop.f32.mrf.mxu2  ;;  %v1050_v13 = vpop.f32.mrf.mxu3 }
 0x39b   : > { %v1948_v36 = vadd.f32 %v1036_v12, %v1005_v14  ;;  %v1950_v16 = vadd.f32 %v1050_v13, %v1005_v14 }
 0x39d   : > { %v1055_v1 = vand.u32 2147483647, %v1948_v36  ;;  %v1056_v17 = vand.u32 2147483647, %v1950_v16  ;;  %vm1071_vm10 = vcmp.ge.f32.partialorder %v1948_v36, 0.0  ;;  %vm1072_vm11 = vcmp.ge.f32.partialorder %v1950_v16, 0.0 }
 0x39f   : > { %v1059_v19 = vsub.f32 0.0, %v1055_v1  ;;  %v1060_v63 = vsub.f32 0.0, %v1056_v17 }
 0x3a1   : > { %v1063_v20 = vmul.f32 1.442695, %v1059_v19  ;;  %v1065_v28 = vmul.f32 1.442695, %v1060_v63 }
 0x3a2   : > { %v1038_v59 = vpop.f32.mrf.mxu2  ;;  %v1052_v58 = vpop.f32.mrf.mxu3 }
 0x3a3   : > { %1385 = vpow2.f32 %v1063_v20  ;;  %v1039_v10 = vadd.f32 %v1038_v59, %v1010_v18  ;;  %v1954_v33 = vadd.f32 %v1052_v58, %v1010_v18 }
 0x3a4   : > { %1387 = vpow2.f32 %v1065_v28 }
 0x3a5   : > { %v1057_v21 = vand.u32 2147483647, %v1039_v10  ;;  %v1058_v22 = vand.u32 2147483647, %v1954_v33  ;;  %vm1073_vm12 = vcmp.ge.f32.partialorder %v1039_v10, 0.0  ;;  %vm1074_vm13 = vcmp.ge.f32.partialorder %v1954_v33, 0.0 }
 0x3a7   : > { %v1061_v15 = vsub.f32 0.0, %v1057_v21  ;;  %v1062_v25 = vsub.f32 0.0, %v1058_v22 }
 0x3a9   : > { %v1386_v26 = vpop.eup %1385  ;;  %v1067_v27 = vmul.f32 1.442695, %v1061_v15  ;;  %v1069_v29 = vmul.f32 1.442695, %v1062_v25 }
 0x3aa   : > { %v1388_v52 = vpop.eup %1387  ;;  %v1075_v32 = vmul.f32 2.0, %v1386_v26  ;;  %v1083_v34 = vadd.f32 2.0, %v1386_v26  ;;  %v1095_v35 = vmul.f32 %v1386_v26, %v1386_v26 }
 0x3ab   : > { %v1076_v38 = vmul.f32 2.0, %v1388_v52  ;;  %v1084_v23 = vadd.f32 2.0, %v1388_v52  ;;  %v1096_v24 = vmul.f32 %v1388_v52, %v1388_v52  ;;  %1389 = vpow2.f32 %v1067_v27 }
 0x3ac   : > { %v1079_v51 = vadd.f32 1.0, %v1075_v32  ;;  %v1087_v39 = vmul.f32 %v1386_v26, %v1083_v34  ;;  %v1099_v41 = vmul.f32 2.0, %v1095_v35  ;;  %1391 = vpow2.f32 %v1069_v29 }
 0x3ad   : > { %v1080_v45 = vadd.f32 1.0, %v1076_v38  ;;  %v1088_v46 = vmul.f32 %v1388_v52, %v1084_v23  ;;  %v1100_v43 = vmul.f32 2.0, %v1096_v24 }
 0x3ae   : > { %v1091_v47 = vsel %vm1071_vm10, %v1079_v51, %v1087_v39  ;;  %v1103_v42 = vsel %vm1071_vm10, %v1099_v41, 2.0 }
 0x3af   : > { %v1092_v6 = vsel %vm1072_vm11, %v1080_v45, %v1088_v46  ;;  %v1104_v44 = vsel %vm1072_vm11, %v1100_v43, 2.0  ;;  %v1107_v56 = vadd.f32 %v1103_v42, %v1091_v47  ;;  %v1111_v12 = vmul.f32 %v1091_v47, %v1948_v36  ;;  %v1123_v36 = vld [vmem:[%s2008_s8] sm:$0x3] }
 0x3b0   : > { %v1108_v30 = vadd.f32 %v1104_v44, %v1092_v6  ;;  %v1112_v17 = vmul.f32 %v1092_v6, %v1950_v16  ;;  %v1130_v16 = vpop.permute.xlu2 %1129 }
 0x3b1   : > { %v1390_v48 = vpop.eup %1389  ;;  %1393 = vrcp.f32 %v1107_v56 }
 0x3b2   : > { %v1392_v7 = vpop.eup %1391  ;;  %v1077_v53 = vmul.f32 2.0, %v1390_v48  ;;  %v1085_v55 = vadd.f32 2.0, %v1390_v48  ;;  %v1097_v49 = vmul.f32 %v1390_v48, %v1390_v48  ;;  %1395 = vrcp.f32 %v1108_v30 }
 0x3b3   : > { %v1078_v11 = vmul.f32 2.0, %v1392_v7  ;;  %v1086_v50 = vadd.f32 2.0, %v1392_v7  ;;  %v1098_v57 = vmul.f32 %v1392_v7, %v1392_v7 }
 0x3b4   : > { %v1081_v61 = vadd.f32 1.0, %v1077_v53  ;;  %v1089_v62 = vmul.f32 %v1390_v48, %v1085_v55  ;;  %v1101_v31 = vmul.f32 2.0, %v1097_v49 }
 0x3b5   : > { %v1082_v54 = vadd.f32 1.0, %v1078_v11  ;;  %v1090_v2 = vmul.f32 %v1392_v7, %v1086_v50  ;;  %v1102_v0 = vmul.f32 2.0, %v1098_v57 }
 0x3b6   : > { %v1093_v37 = vsel %vm1073_vm12, %v1081_v61, %v1089_v62  ;;  %v1105_v3 = vsel %vm1073_vm12, %v1101_v31, 2.0 }
 0x3b7   : > { %v1109_v5 = vadd.f32 %v1105_v3, %v1093_v37  ;;  %v1094_v8 = vsel %vm1074_vm13, %v1082_v54, %v1090_v2  ;;  %v1106_v9 = vsel %vm1074_vm13, %v1102_v0, 2.0  ;;  %v1394_v60 = vpop.eup %1393  ;;  %v1113_v13 = vmul.f32 %v1093_v37, %v1039_v10 }
 0x3b8   : > { %v1110_v40 = vadd.f32 %v1106_v9, %v1094_v8  ;;  %v1396_v14 = vpop.eup %1395  ;;  %v1114_v19 = vmul.f32 %v1094_v8, %v1954_v33  ;;  %v1119_v18 = vmul.f32 %v1394_v60, %v1111_v12  ;;  %v1166_v25 = vpop.permute.xlu2 %1165 }
 0x3b9   : > { %1397 = vrcp.f32 %v1109_v5  ;;  %v1120_v28 = vmul.f32 %v1396_v14, %v1112_v17 }
 0x3ba   : > { %1399 = vrcp.f32 %v1110_v40 }
 0x3bf   : > { %v1398_v1 = vpop.eup %1397 }
 0x3c0   : > { %v1400_v63 = vpop.eup %1399  ;;  %v1121_v20 = vmul.f32 %v1398_v1, %v1113_v13 }
 0x3c1   : > { %v1122_v59 = vmul.f32 %v1400_v63, %v1114_v19 }
 0x3c2   : > { %v1124_v58 = vpack.c.bf16 %v1121_v20, %v1119_v18 }
 0x3c3   : > { %v1125_v21 = vpack.c.bf16 %v1122_v59, %v1120_v28 }
 0x3c4   : > { %1143 = vmatpush.bf16.msrb.mxu0 %v1124_v58 }
 0x3c5   : > { %1156 = vmatpush.bf16.msrb.mxu1 %v1125_v21 }
 0x3c7   : > { %1270 = vmatmul.msk.bf16.vlgmr.msrb.gmra.mxu0 %vm1132_vm14, %v1123_v36 }
 0x3c8   : > { %1271 = vmatmul.msk.bf16.vlgmr.msrb.gmra.mxu1 %vm1132_vm14, %v1123_v36 }
 0x444   : > { %v1145_v10 = vpop.f32.mrf.mxu0 }
 0x445   : > { %v1158_v33 = vpop.f32.mrf.mxu1  ;;  %v1146_v22 = vadd.f32 %v1145_v10, %v1130_v16 }
 0x446   : > { %v1159_v15 = vadd.f32 %v1158_v33, %v1130_v16 }
 0x447   : > { %v1168_v27 = vmul.f32 %v1166_v25, %v1146_v22 }
 0x448   : > { %v1169_v26 = vmul.f32 %v1166_v25, %v1159_v15 }
 0x44a   : > { %v1172_v29 = vrot.slane %v1169_v26, 4 }
 0x44c   : > { %v1147_v52 = vpop.f32.mrf.mxu0  ;;  %v1173_v32 = vsel %vm900_vm4, %v1168_v27, %v1172_v29 }
 0x44d   : > { %v1160_v34 = vpop.f32.mrf.mxu1  ;;  %v1175_v35 = vadd.f32 %v1173_v32, %v1623_v4 }
 0x44f   : > { %1176 = vst [vmem:[%s379_s15] sm:$0xff] %v1175_v35 }
 0x450   : > { %1428 = shalt.err (!%p1425_p3)
}
 0x451   : > { %1280 = dma.vmem_to_hbm [thread:$0]  (%p1600_p5), %s1192_s16, 128, %s1194_s22, %s1178_s21  }
 0x452 PF: > { %p1286_p4 = scmp.ge.s32.totalorder %s1463_s20, 2  ;;  %s1205_s25 = sand.u32 1, %s1451_s17  }
 0x453   : > { %s1206_s15 = scalar_lea.sflag [#allocation3], %s1205_s25 }
 0x454   : > { %p1283_p7 = pnand %p1286_p4, %p1604_p6 }
 0x456   : > { %p1284_p8 = pneg %p1283_p7 }
 0x458   : > { %1446 = dma.done.wait (%p1284_p8), %s1206_s15, 128  }
 0x459   : > { %1448 = vsyncadd (%p1284_p8), %s1206_s15, 4294967168  ;;  %p21_p9 = scmp.ge.s32.totalorder %s1587_s23, 4   ;;  %s2016_s17 = smov %s1455_s18 }
 0x45a   : > { %s2017_s18 = smov %s1459_s19  ;;  %s2018_s19 = smov %s1598_s26 }
 0x45b   : > { %s2019_s20 = smov %s1587_s23  ;;  %23 = sbr.rel (!%p21_p9) target bundleno = 5 (0x5), region = 99 }
 0x460   :  { %1212 = vsyncpa [#allocation3], 1 }
 0x461   :  { %1214 = vsyncpa [#allocation3 + $0x1], 1 }

</bundles_post_ra>
